<compile_context>
chip_gen: v6e
topology: v6e:2x2x1
jax: 0.10.0
libtpu: 0.0.40
codegen_flags: <defaults>
</compile_context>

<pallas_src>
import math

import jax
import jax.numpy as jnp
from jax import lax
from jax.experimental import pallas as pl
from jax.experimental.pallas import tpu as pltpu

# ---- model hyperparameters --------------------------------------------------
D_MODEL = 32
N_HEADS = 4
D_HEAD  = D_MODEL // N_HEADS          # 8
D_FF    = 4 * D_MODEL                 # 128 (lane-dense)
LN_EPS  = 1e-5
SCALE   = 1.0 / math.sqrt(D_HEAD)


# ------------------------------- the kernel ----------------------------------
def encoder_layer_kernel(x_ref, wqkv_ref, bqkv_ref, wo_ref, bo_ref,
                         w1_ref, b1_ref, w2_ref, b2_ref,
                         g1_ref, be1_ref, g2_ref, be2_ref, out_ref):
    BB, L, D = x_ref.shape
    x2 = x_ref[...].reshape(BB * L, D)                               # (BB*L, D)

    # --- fused Q/K/V projection: a single MXU matmul for all heads -----------
    qkv = jnp.dot(x2, wqkv_ref[...], preferred_element_type=jnp.float32)
    qkv = qkv + bqkv_ref[...]                                        # (BB*L, 3D)

    # --- multi-head scaled-dot-product attention -----------------------------
    # Head loop is unrolled (N_HEADS=4). The per-head output projection is
    # folded into the accumulation, so no lane-concat of head outputs is needed.
    attn_out = jnp.zeros((BB * L, D), jnp.float32)
    for h in range(N_HEADS):
        lo = h * D_HEAD
        q_h = qkv[:, lo:lo + D_HEAD].reshape(BB, L, D_HEAD)
        k_h = qkv[:, D + lo:D + lo + D_HEAD].reshape(BB, L, D_HEAD)
        v_h = qkv[:, 2 * D + lo:2 * D + lo + D_HEAD].reshape(BB, L, D_HEAD)

        s = jnp.einsum('bqd,bkd->bqk', q_h, k_h,
                       preferred_element_type=jnp.float32) * SCALE   # (BB, L, L)
        s = s - jnp.max(s, axis=-1, keepdims=True)                   # stable softmax
        p = jnp.exp(s)
        inv = pl.reciprocal(jnp.sum(p, axis=-1, keepdims=True), approx=True)
        att = p * inv
        ctx = jnp.einsum('bqk,bkd->bqd', att, v_h,
                         preferred_element_type=jnp.float32)         # (BB, L, Dh)
        attn_out = attn_out + jnp.dot(ctx.reshape(BB * L, D_HEAD), wo_ref[h],
                                      preferred_element_type=jnp.float32)
    attn_out = attn_out + bo_ref[...]

    # --- residual + LayerNorm1 -----------------------------------------------
    x1 = x2 + attn_out
    mu = jnp.mean(x1, axis=-1, keepdims=True)
    var = jnp.mean((x1 - mu) ** 2, axis=-1, keepdims=True)
    xn = (x1 - mu) * lax.rsqrt(var + LN_EPS) * g1_ref[...] + be1_ref[...]

    # --- position-wise FFN (1x1 convs == pointwise linears) ------------------
    y = jnp.dot(xn, w1_ref[...], preferred_element_type=jnp.float32) + b1_ref[...]
    y = jnp.maximum(y, 0.0)                                          # relu activation
    y = jnp.dot(y, w2_ref[...], preferred_element_type=jnp.float32) + b2_ref[...]

    # --- residual + LayerNorm2 -----------------------------------------------
    z = xn + y
    mu2 = jnp.mean(z, axis=-1, keepdims=True)
    var2 = jnp.mean((z - mu2) ** 2, axis=-1, keepdims=True)
    out = (z - mu2) * lax.rsqrt(var2 + LN_EPS) * g2_ref[...] + be2_ref[...]

    out_ref[...] = out.reshape(BB, L, D)


# -------------------------------- wrapper ------------------------------------
def informer_encoder_layer(x, params, attn_mask=None, *, block_b=None):
    # TODO(synk): attn_mask is ignored (None for the encoder's FullAttention path).
    del attn_mask
    B, L, D = x.shape
    assert D == D_MODEL
    (wqkv, bqkv, wo_heads, bo, w1, b1, w2, b2, g1, be1, g2, be2) = params

    if block_b is None:
        block_b = 2 if B % 2 == 0 else 1        # BB graphs/sequences per grid step
    assert B % block_b == 0
    grid = (B // block_b,)

    def w2d(shape):
        return pl.BlockSpec(shape, lambda b: (0, 0))

    out = pl.pallas_call(
        encoder_layer_kernel,
        out_shape=jax.ShapeDtypeStruct((B, L, D), jnp.float32),
        grid=grid,
        in_specs=[
            pl.BlockSpec((block_b, L, D), lambda b: (b, 0, 0)),      # x
            w2d(wqkv.shape), w2d(bqkv.shape),                        # fused QKV proj
            pl.BlockSpec(wo_heads.shape, lambda b: (0, 0, 0)),       # Wo pre-split per head
            w2d(bo.shape),
            w2d(w1.shape), w2d(b1.shape),                            # conv1 (1x1)
            w2d(w2.shape), w2d(b2.shape),                            # conv2 (1x1)
            w2d(g1.shape), w2d(be1.shape),                           # LayerNorm1
            w2d(g2.shape), w2d(be2.shape),                           # LayerNorm2
        ],
        out_specs=pl.BlockSpec((block_b, L, D), lambda b: (b, 0, 0)),
        compiler_params=pltpu.CompilerParams(dimension_semantics=("parallel",)),
    )(x, wqkv, bqkv, wo_heads, bo, w1, b1, w2, b2, g1, be1, g2, be2)
    return out, None   # attn is None (FullAttention with output_attention=False)


# ------------------------ deterministic parameter init ----------------------
def init_params(key):
    ks = jax.random.split(key, 10)
    s = 0.1
    wq = jax.random.normal(ks[0], (D_MODEL, D_MODEL), jnp.float32) * s
    wk = jax.random.normal(ks[1], (D_MODEL, D_MODEL), jnp.float32) * s
    wv = jax.random.normal(ks[2], (D_MODEL, D_MODEL), jnp.float32) * s
    wqkv = jnp.concatenate([wq, wk, wv], axis=1)                     # (D, 3D), hoisted concat
    bqkv = jax.random.normal(ks[3], (1, 3 * D_MODEL), jnp.float32) * s
    wo = jax.random.normal(ks[4], (D_MODEL, D_MODEL), jnp.float32) * s
    wo_heads = wo.reshape(N_HEADS, D_HEAD, D_MODEL)                  # hoisted per-head split
    bo = jax.random.normal(ks[5], (1, D_MODEL), jnp.float32) * s
    w1 = jax.random.normal(ks[6], (D_MODEL, D_FF), jnp.float32) * s
    b1 = jax.random.normal(ks[7], (1, D_FF), jnp.float32) * s
    w2 = jax.random.normal(ks[8], (D_FF, D_MODEL), jnp.float32) * s
    b2 = jax.random.normal(ks[9], (1, D_MODEL), jnp.float32) * s
    g1 = jnp.ones((1, D_MODEL), jnp.float32)
    be1 = jnp.zeros((1, D_MODEL), jnp.float32)
    g2 = jnp.ones((1, D_MODEL), jnp.float32)
    be2 = jnp.zeros((1, D_MODEL), jnp.float32)
    return (wqkv, bqkv, wo_heads, bo, w1, b1, w2, b2, g1, be1, g2, be2)


# --------------------------- pure-JAX reference ------------------------------
def ref_forward(x, params):
    (wqkv, bqkv, wo_heads, bo, w1, b1, w2, b2, g1, be1, g2, be2) = params
    B, L, D = x.shape
    qkv = x @ wqkv + bqkv[0]
    q, k, v = qkv[..., :D], qkv[..., D:2 * D], qkv[..., 2 * D:]
    q = q.reshape(B, L, N_HEADS, D_HEAD)
    k = k.reshape(B, L, N_HEADS, D_HEAD)
    v = v.reshape(B, L, N_HEADS, D_HEAD)
    s = jnp.einsum('blhe,bshe->bhls', q, k) * SCALE
    a = jax.nn.softmax(s, axis=-1)
    ctx = jnp.einsum('bhls,bshd->blhd', a, v).reshape(B, L, D)
    attn_out = ctx @ wo_heads.reshape(D, D) + bo[0]
    x1 = x + attn_out

    def ln(t, g, b):
        mu = t.mean(-1, keepdims=True)
        var = ((t - mu) ** 2).mean(-1, keepdims=True)
        return (t - mu) / jnp.sqrt(var + LN_EPS) * g + b

    xn = ln(x1, g1[0], be1[0])
    y = jax.nn.relu(xn @ w1 + b1[0]) @ w2 + b2[0]
    return ln(xn + y, g2[0], be2[0])


# ----------------------------------- main ------------------------------------
if __name__ == "__main__":
    key = jax.random.PRNGKey(0)
    kx, kp = jax.random.split(key)

    B, L = 4, 16                                   # 2 sequences per grid step -> grid=(2,)
    x = jax.random.normal(kx, (B, L, D_MODEL), jnp.float32)
    params = init_params(kp)

    out, attn = informer_encoder_layer(x, params)
    out = jax.block_until_ready(out)
    assert out.shape == (B, L, D_MODEL), out.shape
    assert attn is None

    ref = ref_forward(x, params)
    if not jnp.allclose(out, ref, rtol=3e-3, atol=3e-3):
        raise AssertionError(f"mismatch: max abs diff {jnp.abs(out - ref).max()}")

    print("KERNEL_OK")
</pallas_src>

<mosaic_0001>
module attributes {stable_mosaic.version = 11 : i64} {
  func.func @encoder_layer_kernel(%arg0: i32, %arg1: memref<2x16x32xf32, #tpu.memory_space<vmem>>, %arg2: memref<32x96xf32, #tpu.memory_space<vmem>>, %arg3: memref<1x96xf32, #tpu.memory_space<vmem>>, %arg4: memref<4x8x32xf32, #tpu.memory_space<vmem>>, %arg5: memref<1x32xf32, #tpu.memory_space<vmem>>, %arg6: memref<32x128xf32, #tpu.memory_space<vmem>>, %arg7: memref<1x128xf32, #tpu.memory_space<vmem>>, %arg8: memref<128x32xf32, #tpu.memory_space<vmem>>, %arg9: memref<1x32xf32, #tpu.memory_space<vmem>>, %arg10: memref<1x32xf32, #tpu.memory_space<vmem>>, %arg11: memref<1x32xf32, #tpu.memory_space<vmem>>, %arg12: memref<1x32xf32, #tpu.memory_space<vmem>>, %arg13: memref<1x32xf32, #tpu.memory_space<vmem>>, %arg14: memref<2x16x32xf32, #tpu.memory_space<vmem>>) attributes {dimension_semantics = [#tpu.dimension_semantics<parallel>], iteration_bounds = array<i64: 2>, scalar_prefetch = 0 : i64, scratch_operands = 0 : i64, tpu.core_type = #tpu.core_type<tc>, window_params = [{transform_indices = @transform_0, window_bounds = array<i64: 2, 16, 32>}, {pipeline_mode = #tpu.pipeline_mode<synchronous>, transform_indices = @transform_1, window_bounds = array<i64: 32, 96>}, {pipeline_mode = #tpu.pipeline_mode<synchronous>, transform_indices = @transform_2, window_bounds = array<i64: 1, 96>}, {pipeline_mode = #tpu.pipeline_mode<synchronous>, transform_indices = @transform_3, window_bounds = array<i64: 4, 8, 32>}, {pipeline_mode = #tpu.pipeline_mode<synchronous>, transform_indices = @transform_4, window_bounds = array<i64: 1, 32>}, {pipeline_mode = #tpu.pipeline_mode<synchronous>, transform_indices = @transform_5, window_bounds = array<i64: 32, 128>}, {pipeline_mode = #tpu.pipeline_mode<synchronous>, transform_indices = @transform_6, window_bounds = array<i64: 1, 128>}, {pipeline_mode = #tpu.pipeline_mode<synchronous>, transform_indices = @transform_7, window_bounds = array<i64: 128, 32>}, {pipeline_mode = #tpu.pipeline_mode<synchronous>, transform_indices = @transform_8, window_bounds = array<i64: 1, 32>}, {pipeline_mode = #tpu.pipeline_mode<synchronous>, transform_indices = @transform_9, window_bounds = array<i64: 1, 32>}, {pipeline_mode = #tpu.pipeline_mode<synchronous>, transform_indices = @transform_10, window_bounds = array<i64: 1, 32>}, {pipeline_mode = #tpu.pipeline_mode<synchronous>, transform_indices = @transform_11, window_bounds = array<i64: 1, 32>}, {pipeline_mode = #tpu.pipeline_mode<synchronous>, transform_indices = @transform_12, window_bounds = array<i64: 1, 32>}, {transform_indices = @transform_13, window_bounds = array<i64: 2, 16, 32>}]} {
    %c0 = arith.constant 0 : index
    %c0_0 = arith.constant 0 : index
    %c0_1 = arith.constant 0 : index
    %0 = vector.load %arg1[%c0, %c0_0, %c0_1] : memref<2x16x32xf32, #tpu.memory_space<vmem>>, vector<2x16x32xf32>
    %1 = vector.shape_cast %0 : vector<2x16x32xf32> to vector<32x32xf32>
    %c0_2 = arith.constant 0 : index
    %c0_3 = arith.constant 0 : index
    %2 = vector.load %arg2[%c0_2, %c0_3] : memref<32x96xf32, #tpu.memory_space<vmem>>, vector<32x96xf32>
    %cst = arith.constant dense<0.000000e+00> : vector<32x96xf32>
    %3 = tpu.matmul %1, %2, %cst {dimension_numbers = #tpu.dot_dimension_numbers<[1], [0], [0], [1], [0, 0, 1, 1], [], []>} : vector<32x32xf32>, vector<32x96xf32>, vector<32x96xf32> -> vector<32x96xf32>
    %c0_4 = arith.constant 0 : index
    %c0_5 = arith.constant 0 : index
    %4 = vector.load %arg3[%c0_4, %c0_5] : memref<1x96xf32, #tpu.memory_space<vmem>>, vector<1x96xf32>
    %5 = vector.broadcast %4 : vector<1x96xf32> to vector<32x96xf32>
    %6 = arith.addf %3, %5 : vector<32x96xf32>
    %cst_6 = arith.constant 0.000000e+00 : f32
    %7 = vector.broadcast %cst_6 : f32 to vector<32x32xf32>
    %8 = vector.extract_strided_slice %6 {offsets = [0, 0], sizes = [32, 8], strides = [1, 1]} : vector<32x96xf32> to vector<32x8xf32>
    %9 = vector.shape_cast %8 : vector<32x8xf32> to vector<2x16x8xf32>
    %10 = vector.extract_strided_slice %6 {offsets = [0, 32], sizes = [32, 8], strides = [1, 1]} : vector<32x96xf32> to vector<32x8xf32>
    %11 = vector.shape_cast %10 : vector<32x8xf32> to vector<2x16x8xf32>
    %12 = vector.extract_strided_slice %6 {offsets = [0, 64], sizes = [32, 8], strides = [1, 1]} : vector<32x96xf32> to vector<32x8xf32>
    %13 = vector.shape_cast %12 : vector<32x8xf32> to vector<2x16x8xf32>
    "tpu.trace_start"() <{level = 10 : i32, message = "bqd,bkd->bqk"}> : () -> ()
    %cst_7 = arith.constant dense<0.000000e+00> : vector<2x16x16xf32>
    %14 = tpu.matmul %9, %11, %cst_7 {dimension_numbers = #tpu.dot_dimension_numbers<[2], [2], [1], [1], [0, 0, 0, 1, 1, 1], [0], [0]>} : vector<2x16x8xf32>, vector<2x16x8xf32>, vector<2x16x16xf32> -> vector<2x16x16xf32>
    "tpu.trace_stop"() : () -> ()
    %cst_8 = arith.constant 0.353553385 : f32
    %15 = vector.broadcast %cst_8 : f32 to vector<2x16x16xf32>
    %16 = arith.mulf %14, %15 : vector<2x16x16xf32>
    %cst_9 = arith.constant dense<0xFF800000> : vector<2x16xf32>
    %17 = vector.multi_reduction <maximumf>, %16, %cst_9 [2] : vector<2x16x16xf32> to vector<2x16xf32>
    %18 = vector.shape_cast %17 : vector<2x16xf32> to vector<2x16x1xf32>
    %19 = vector.broadcast %18 : vector<2x16x1xf32> to vector<2x16x16xf32>
    %20 = arith.subf %16, %19 : vector<2x16x16xf32>
    %21 = math.exp %20 : vector<2x16x16xf32>
    %cst_10 = arith.constant dense<0.000000e+00> : vector<2x16xf32>
    %22 = vector.multi_reduction <add>, %21, %cst_10 [2] : vector<2x16x16xf32> to vector<2x16xf32>
    %23 = vector.shape_cast %22 : vector<2x16xf32> to vector<2x16x1xf32>
    %24 = tpu.reciprocal %23 {approx = true} : vector<2x16x1xf32> -> vector<2x16x1xf32>
    %25 = vector.broadcast %24 : vector<2x16x1xf32> to vector<2x16x16xf32>
    %26 = arith.mulf %21, %25 : vector<2x16x16xf32>
    "tpu.trace_start"() <{level = 10 : i32, message = "bqk,bkd->bqd"}> : () -> ()
    %cst_11 = arith.constant dense<0.000000e+00> : vector<2x16x8xf32>
    %27 = tpu.matmul %26, %13, %cst_11 {dimension_numbers = #tpu.dot_dimension_numbers<[2], [1], [1], [2], [0, 0, 0, 1, 1, 2], [0], [0]>} : vector<2x16x16xf32>, vector<2x16x8xf32>, vector<2x16x8xf32> -> vector<2x16x8xf32>
    "tpu.trace_stop"() : () -> ()
    %28 = vector.shape_cast %27 : vector<2x16x8xf32> to vector<32x8xf32>
    %c0_12 = arith.constant 0 : index
    %c0_13 = arith.constant 0 : index
    %c0_14 = arith.constant 0 : index
    %29 = vector.load %arg4[%c0_12, %c0_13, %c0_14] : memref<4x8x32xf32, #tpu.memory_space<vmem>>, vector<1x8x32xf32>
    %30 = vector.shape_cast %29 : vector<1x8x32xf32> to vector<8x32xf32>
    %cst_15 = arith.constant dense<0.000000e+00> : vector<32x32xf32>
    %31 = tpu.matmul %28, %30, %cst_15 {dimension_numbers = #tpu.dot_dimension_numbers<[1], [0], [0], [1], [0, 0, 1, 1], [], []>} : vector<32x8xf32>, vector<8x32xf32>, vector<32x32xf32> -> vector<32x32xf32>
    %32 = arith.addf %7, %31 : vector<32x32xf32>
    %33 = vector.extract_strided_slice %6 {offsets = [0, 8], sizes = [32, 8], strides = [1, 1]} : vector<32x96xf32> to vector<32x8xf32>
    %34 = vector.shape_cast %33 : vector<32x8xf32> to vector<2x16x8xf32>
    %35 = vector.extract_strided_slice %6 {offsets = [0, 40], sizes = [32, 8], strides = [1, 1]} : vector<32x96xf32> to vector<32x8xf32>
    %36 = vector.shape_cast %35 : vector<32x8xf32> to vector<2x16x8xf32>
    %37 = vector.extract_strided_slice %6 {offsets = [0, 72], sizes = [32, 8], strides = [1, 1]} : vector<32x96xf32> to vector<32x8xf32>
    %38 = vector.shape_cast %37 : vector<32x8xf32> to vector<2x16x8xf32>
    "tpu.trace_start"() <{level = 10 : i32, message = "bqd,bkd->bqk"}> : () -> ()
    %cst_16 = arith.constant dense<0.000000e+00> : vector<2x16x16xf32>
    %39 = tpu.matmul %34, %36, %cst_16 {dimension_numbers = #tpu.dot_dimension_numbers<[2], [2], [1], [1], [0, 0, 0, 1, 1, 1], [0], [0]>} : vector<2x16x8xf32>, vector<2x16x8xf32>, vector<2x16x16xf32> -> vector<2x16x16xf32>
    "tpu.trace_stop"() : () -> ()
    %cst_17 = arith.constant 0.353553385 : f32
    %40 = vector.broadcast %cst_17 : f32 to vector<2x16x16xf32>
    %41 = arith.mulf %39, %40 : vector<2x16x16xf32>
    %cst_18 = arith.constant dense<0xFF800000> : vector<2x16xf32>
    %42 = vector.multi_reduction <maximumf>, %41, %cst_18 [2] : vector<2x16x16xf32> to vector<2x16xf32>
    %43 = vector.shape_cast %42 : vector<2x16xf32> to vector<2x16x1xf32>
    %44 = vector.broadcast %43 : vector<2x16x1xf32> to vector<2x16x16xf32>
    %45 = arith.subf %41, %44 : vector<2x16x16xf32>
    %46 = math.exp %45 : vector<2x16x16xf32>
    %cst_19 = arith.constant dense<0.000000e+00> : vector<2x16xf32>
    %47 = vector.multi_reduction <add>, %46, %cst_19 [2] : vector<2x16x16xf32> to vector<2x16xf32>
    %48 = vector.shape_cast %47 : vector<2x16xf32> to vector<2x16x1xf32>
    %49 = tpu.reciprocal %48 {approx = true} : vector<2x16x1xf32> -> vector<2x16x1xf32>
    %50 = vector.broadcast %49 : vector<2x16x1xf32> to vector<2x16x16xf32>
    %51 = arith.mulf %46, %50 : vector<2x16x16xf32>
    "tpu.trace_start"() <{level = 10 : i32, message = "bqk,bkd->bqd"}> : () -> ()
    %cst_20 = arith.constant dense<0.000000e+00> : vector<2x16x8xf32>
    %52 = tpu.matmul %51, %38, %cst_20 {dimension_numbers = #tpu.dot_dimension_numbers<[2], [1], [1], [2], [0, 0, 0, 1, 1, 2], [0], [0]>} : vector<2x16x16xf32>, vector<2x16x8xf32>, vector<2x16x8xf32> -> vector<2x16x8xf32>
    "tpu.trace_stop"() : () -> ()
    %53 = vector.shape_cast %52 : vector<2x16x8xf32> to vector<32x8xf32>
    %c1 = arith.constant 1 : index
    %c0_21 = arith.constant 0 : index
    %c0_22 = arith.constant 0 : index
    %54 = vector.load %arg4[%c1, %c0_21, %c0_22] : memref<4x8x32xf32, #tpu.memory_space<vmem>>, vector<1x8x32xf32>
    %55 = vector.shape_cast %54 : vector<1x8x32xf32> to vector<8x32xf32>
    %cst_23 = arith.constant dense<0.000000e+00> : vector<32x32xf32>
    %56 = tpu.matmul %53, %55, %cst_23 {dimension_numbers = #tpu.dot_dimension_numbers<[1], [0], [0], [1], [0, 0, 1, 1], [], []>} : vector<32x8xf32>, vector<8x32xf32>, vector<32x32xf32> -> vector<32x32xf32>
    %57 = arith.addf %32, %56 : vector<32x32xf32>
    %58 = vector.extract_strided_slice %6 {offsets = [0, 16], sizes = [32, 8], strides = [1, 1]} : vector<32x96xf32> to vector<32x8xf32>
    %59 = vector.shape_cast %58 : vector<32x8xf32> to vector<2x16x8xf32>
    %60 = vector.extract_strided_slice %6 {offsets = [0, 48], sizes = [32, 8], strides = [1, 1]} : vector<32x96xf32> to vector<32x8xf32>
    %61 = vector.shape_cast %60 : vector<32x8xf32> to vector<2x16x8xf32>
    %62 = vector.extract_strided_slice %6 {offsets = [0, 80], sizes = [32, 8], strides = [1, 1]} : vector<32x96xf32> to vector<32x8xf32>
    %63 = vector.shape_cast %62 : vector<32x8xf32> to vector<2x16x8xf32>
    "tpu.trace_start"() <{level = 10 : i32, message = "bqd,bkd->bqk"}> : () -> ()
    %cst_24 = arith.constant dense<0.000000e+00> : vector<2x16x16xf32>
    %64 = tpu.matmul %59, %61, %cst_24 {dimension_numbers = #tpu.dot_dimension_numbers<[2], [2], [1], [1], [0, 0, 0, 1, 1, 1], [0], [0]>} : vector<2x16x8xf32>, vector<2x16x8xf32>, vector<2x16x16xf32> -> vector<2x16x16xf32>
    "tpu.trace_stop"() : () -> ()
    %cst_25 = arith.constant 0.353553385 : f32
    %65 = vector.broadcast %cst_25 : f32 to vector<2x16x16xf32>
    %66 = arith.mulf %64, %65 : vector<2x16x16xf32>
    %cst_26 = arith.constant dense<0xFF800000> : vector<2x16xf32>
    %67 = vector.multi_reduction <maximumf>, %66, %cst_26 [2] : vector<2x16x16xf32> to vector<2x16xf32>
    %68 = vector.shape_cast %67 : vector<2x16xf32> to vector<2x16x1xf32>
    %69 = vector.broadcast %68 : vector<2x16x1xf32> to vector<2x16x16xf32>
    %70 = arith.subf %66, %69 : vector<2x16x16xf32>
    %71 = math.exp %70 : vector<2x16x16xf32>
    %cst_27 = arith.constant dense<0.000000e+00> : vector<2x16xf32>
    %72 = vector.multi_reduction <add>, %71, %cst_27 [2] : vector<2x16x16xf32> to vector<2x16xf32>
    %73 = vector.shape_cast %72 : vector<2x16xf32> to vector<2x16x1xf32>
    %74 = tpu.reciprocal %73 {approx = true} : vector<2x16x1xf32> -> vector<2x16x1xf32>
    %75 = vector.broadcast %74 : vector<2x16x1xf32> to vector<2x16x16xf32>
    %76 = arith.mulf %71, %75 : vector<2x16x16xf32>
    "tpu.trace_start"() <{level = 10 : i32, message = "bqk,bkd->bqd"}> : () -> ()
    %cst_28 = arith.constant dense<0.000000e+00> : vector<2x16x8xf32>
    %77 = tpu.matmul %76, %63, %cst_28 {dimension_numbers = #tpu.dot_dimension_numbers<[2], [1], [1], [2], [0, 0, 0, 1, 1, 2], [0], [0]>} : vector<2x16x16xf32>, vector<2x16x8xf32>, vector<2x16x8xf32> -> vector<2x16x8xf32>
    "tpu.trace_stop"() : () -> ()
    %78 = vector.shape_cast %77 : vector<2x16x8xf32> to vector<32x8xf32>
    %c2 = arith.constant 2 : index
    %c0_29 = arith.constant 0 : index
    %c0_30 = arith.constant 0 : index
    %79 = vector.load %arg4[%c2, %c0_29, %c0_30] : memref<4x8x32xf32, #tpu.memory_space<vmem>>, vector<1x8x32xf32>
    %80 = vector.shape_cast %79 : vector<1x8x32xf32> to vector<8x32xf32>
    %cst_31 = arith.constant dense<0.000000e+00> : vector<32x32xf32>
    %81 = tpu.matmul %78, %80, %cst_31 {dimension_numbers = #tpu.dot_dimension_numbers<[1], [0], [0], [1], [0, 0, 1, 1], [], []>} : vector<32x8xf32>, vector<8x32xf32>, vector<32x32xf32> -> vector<32x32xf32>
    %82 = arith.addf %57, %81 : vector<32x32xf32>
    %83 = vector.extract_strided_slice %6 {offsets = [0, 24], sizes = [32, 8], strides = [1, 1]} : vector<32x96xf32> to vector<32x8xf32>
    %84 = vector.shape_cast %83 : vector<32x8xf32> to vector<2x16x8xf32>
    %85 = vector.extract_strided_slice %6 {offsets = [0, 56], sizes = [32, 8], strides = [1, 1]} : vector<32x96xf32> to vector<32x8xf32>
    %86 = vector.shape_cast %85 : vector<32x8xf32> to vector<2x16x8xf32>
    %87 = vector.extract_strided_slice %6 {offsets = [0, 88], sizes = [32, 8], strides = [1, 1]} : vector<32x96xf32> to vector<32x8xf32>
    %88 = vector.shape_cast %87 : vector<32x8xf32> to vector<2x16x8xf32>
    "tpu.trace_start"() <{level = 10 : i32, message = "bqd,bkd->bqk"}> : () -> ()
    %cst_32 = arith.constant dense<0.000000e+00> : vector<2x16x16xf32>
    %89 = tpu.matmul %84, %86, %cst_32 {dimension_numbers = #tpu.dot_dimension_numbers<[2], [2], [1], [1], [0, 0, 0, 1, 1, 1], [0], [0]>} : vector<2x16x8xf32>, vector<2x16x8xf32>, vector<2x16x16xf32> -> vector<2x16x16xf32>
    "tpu.trace_stop"() : () -> ()
    %cst_33 = arith.constant 0.353553385 : f32
    %90 = vector.broadcast %cst_33 : f32 to vector<2x16x16xf32>
    %91 = arith.mulf %89, %90 : vector<2x16x16xf32>
    %cst_34 = arith.constant dense<0xFF800000> : vector<2x16xf32>
    %92 = vector.multi_reduction <maximumf>, %91, %cst_34 [2] : vector<2x16x16xf32> to vector<2x16xf32>
    %93 = vector.shape_cast %92 : vector<2x16xf32> to vector<2x16x1xf32>
    %94 = vector.broadcast %93 : vector<2x16x1xf32> to vector<2x16x16xf32>
    %95 = arith.subf %91, %94 : vector<2x16x16xf32>
    %96 = math.exp %95 : vector<2x16x16xf32>
    %cst_35 = arith.constant dense<0.000000e+00> : vector<2x16xf32>
    %97 = vector.multi_reduction <add>, %96, %cst_35 [2] : vector<2x16x16xf32> to vector<2x16xf32>
    %98 = vector.shape_cast %97 : vector<2x16xf32> to vector<2x16x1xf32>
    %99 = tpu.reciprocal %98 {approx = true} : vector<2x16x1xf32> -> vector<2x16x1xf32>
    %100 = vector.broadcast %99 : vector<2x16x1xf32> to vector<2x16x16xf32>
    %101 = arith.mulf %96, %100 : vector<2x16x16xf32>
    "tpu.trace_start"() <{level = 10 : i32, message = "bqk,bkd->bqd"}> : () -> ()
    %cst_36 = arith.constant dense<0.000000e+00> : vector<2x16x8xf32>
    %102 = tpu.matmul %101, %88, %cst_36 {dimension_numbers = #tpu.dot_dimension_numbers<[2], [1], [1], [2], [0, 0, 0, 1, 1, 2], [0], [0]>} : vector<2x16x16xf32>, vector<2x16x8xf32>, vector<2x16x8xf32> -> vector<2x16x8xf32>
    "tpu.trace_stop"() : () -> ()
    %103 = vector.shape_cast %102 : vector<2x16x8xf32> to vector<32x8xf32>
    %c3 = arith.constant 3 : index
    %c0_37 = arith.constant 0 : index
    %c0_38 = arith.constant 0 : index
    %104 = vector.load %arg4[%c3, %c0_37, %c0_38] : memref<4x8x32xf32, #tpu.memory_space<vmem>>, vector<1x8x32xf32>
    %105 = vector.shape_cast %104 : vector<1x8x32xf32> to vector<8x32xf32>
    %cst_39 = arith.constant dense<0.000000e+00> : vector<32x32xf32>
    %106 = tpu.matmul %103, %105, %cst_39 {dimension_numbers = #tpu.dot_dimension_numbers<[1], [0], [0], [1], [0, 0, 1, 1], [], []>} : vector<32x8xf32>, vector<8x32xf32>, vector<32x32xf32> -> vector<32x32xf32>
    %107 = arith.addf %82, %106 : vector<32x32xf32>
    %c0_40 = arith.constant 0 : index
    %c0_41 = arith.constant 0 : index
    %108 = vector.load %arg5[%c0_40, %c0_41] : memref<1x32xf32, #tpu.memory_space<vmem>>, vector<1x32xf32>
    %109 = vector.broadcast %108 : vector<1x32xf32> to vector<32x32xf32>
    %110 = arith.addf %107, %109 : vector<32x32xf32>
    %111 = arith.addf %1, %110 : vector<32x32xf32>
    %cst_42 = arith.constant dense<0.000000e+00> : vector<32xf32>
    %112 = vector.multi_reduction <add>, %111, %cst_42 [1] : vector<32x32xf32> to vector<32xf32>
    %113 = vector.shape_cast %112 : vector<32xf32> to vector<32x1xf32>
    %cst_43 = arith.constant 3.200000e+01 : f32
    %114 = vector.broadcast %cst_43 : f32 to vector<32x1xf32>
    %115 = arith.divf %113, %114 : vector<32x1xf32>
    %116 = vector.broadcast %115 : vector<32x1xf32> to vector<32x32xf32>
    %117 = arith.subf %111, %116 : vector<32x32xf32>
    %118 = arith.mulf %117, %117 : vector<32x32xf32>
    %cst_44 = arith.constant dense<0.000000e+00> : vector<32xf32>
    %119 = vector.multi_reduction <add>, %118, %cst_44 [1] : vector<32x32xf32> to vector<32xf32>
    %120 = vector.shape_cast %119 : vector<32xf32> to vector<32x1xf32>
    %cst_45 = arith.constant 3.200000e+01 : f32
    %121 = vector.broadcast %cst_45 : f32 to vector<32x1xf32>
    %122 = arith.divf %120, %121 : vector<32x1xf32>
    %123 = vector.broadcast %115 : vector<32x1xf32> to vector<32x32xf32>
    %124 = arith.subf %111, %123 : vector<32x32xf32>
    %cst_46 = arith.constant 9.99999974E-6 : f32
    %125 = vector.broadcast %cst_46 : f32 to vector<32x1xf32>
    %126 = arith.addf %122, %125 : vector<32x1xf32>
    %127 = math.rsqrt %126 : vector<32x1xf32>
    %128 = vector.broadcast %127 : vector<32x1xf32> to vector<32x32xf32>
    %129 = arith.mulf %124, %128 : vector<32x32xf32>
    %c0_47 = arith.constant 0 : index
    %c0_48 = arith.constant 0 : index
    %130 = vector.load %arg10[%c0_47, %c0_48] : memref<1x32xf32, #tpu.memory_space<vmem>>, vector<1x32xf32>
    %131 = vector.broadcast %130 : vector<1x32xf32> to vector<32x32xf32>
    %132 = arith.mulf %129, %131 : vector<32x32xf32>
    %c0_49 = arith.constant 0 : index
    %c0_50 = arith.constant 0 : index
    %133 = vector.load %arg11[%c0_49, %c0_50] : memref<1x32xf32, #tpu.memory_space<vmem>>, vector<1x32xf32>
    %134 = vector.broadcast %133 : vector<1x32xf32> to vector<32x32xf32>
    %135 = arith.addf %132, %134 : vector<32x32xf32>
    %c0_51 = arith.constant 0 : index
    %c0_52 = arith.constant 0 : index
    %136 = vector.load %arg6[%c0_51, %c0_52] : memref<32x128xf32, #tpu.memory_space<vmem>>, vector<32x128xf32>
    %cst_53 = arith.constant dense<0.000000e+00> : vector<32x128xf32>
    %137 = tpu.matmul %135, %136, %cst_53 {dimension_numbers = #tpu.dot_dimension_numbers<[1], [0], [0], [1], [0, 0, 1, 1], [], []>} : vector<32x32xf32>, vector<32x128xf32>, vector<32x128xf32> -> vector<32x128xf32>
    %c0_54 = arith.constant 0 : index
    %c0_55 = arith.constant 0 : index
    %138 = vector.load %arg7[%c0_54, %c0_55] : memref<1x128xf32, #tpu.memory_space<vmem>>, vector<1x128xf32>
    %139 = vector.broadcast %138 : vector<1x128xf32> to vector<32x128xf32>
    %140 = arith.addf %137, %139 : vector<32x128xf32>
    %cst_56 = arith.constant 0.000000e+00 : f32
    %141 = vector.broadcast %cst_56 : f32 to vector<32x128xf32>
    %142 = arith.maximumf %140, %141 : vector<32x128xf32>
    %c0_57 = arith.constant 0 : index
    %c0_58 = arith.constant 0 : index
    %143 = vector.load %arg8[%c0_57, %c0_58] : memref<128x32xf32, #tpu.memory_space<vmem>>, vector<128x32xf32>
    %cst_59 = arith.constant dense<0.000000e+00> : vector<32x32xf32>
    %144 = tpu.matmul %142, %143, %cst_59 {dimension_numbers = #tpu.dot_dimension_numbers<[1], [0], [0], [1], [0, 0, 1, 1], [], []>} : vector<32x128xf32>, vector<128x32xf32>, vector<32x32xf32> -> vector<32x32xf32>
    %c0_60 = arith.constant 0 : index
    %c0_61 = arith.constant 0 : index
    %145 = vector.load %arg9[%c0_60, %c0_61] : memref<1x32xf32, #tpu.memory_space<vmem>>, vector<1x32xf32>
    %146 = vector.broadcast %145 : vector<1x32xf32> to vector<32x32xf32>
    %147 = arith.addf %144, %146 : vector<32x32xf32>
    %148 = arith.addf %135, %147 : vector<32x32xf32>
    %cst_62 = arith.constant dense<0.000000e+00> : vector<32xf32>
    %149 = vector.multi_reduction <add>, %148, %cst_62 [1] : vector<32x32xf32> to vector<32xf32>
    %150 = vector.shape_cast %149 : vector<32xf32> to vector<32x1xf32>
    %cst_63 = arith.constant 3.200000e+01 : f32
    %151 = vector.broadcast %cst_63 : f32 to vector<32x1xf32>
    %152 = arith.divf %150, %151 : vector<32x1xf32>
    %153 = vector.broadcast %152 : vector<32x1xf32> to vector<32x32xf32>
    %154 = arith.subf %148, %153 : vector<32x32xf32>
    %155 = arith.mulf %154, %154 : vector<32x32xf32>
    %cst_64 = arith.constant dense<0.000000e+00> : vector<32xf32>
    %156 = vector.multi_reduction <add>, %155, %cst_64 [1] : vector<32x32xf32> to vector<32xf32>
    %157 = vector.shape_cast %156 : vector<32xf32> to vector<32x1xf32>
    %cst_65 = arith.constant 3.200000e+01 : f32
    %158 = vector.broadcast %cst_65 : f32 to vector<32x1xf32>
    %159 = arith.divf %157, %158 : vector<32x1xf32>
    %160 = vector.broadcast %152 : vector<32x1xf32> to vector<32x32xf32>
    %161 = arith.subf %148, %160 : vector<32x32xf32>
    %cst_66 = arith.constant 9.99999974E-6 : f32
    %162 = vector.broadcast %cst_66 : f32 to vector<32x1xf32>
    %163 = arith.addf %159, %162 : vector<32x1xf32>
    %164 = math.rsqrt %163 : vector<32x1xf32>
    %165 = vector.broadcast %164 : vector<32x1xf32> to vector<32x32xf32>
    %166 = arith.mulf %161, %165 : vector<32x32xf32>
    %c0_67 = arith.constant 0 : index
    %c0_68 = arith.constant 0 : index
    %167 = vector.load %arg12[%c0_67, %c0_68] : memref<1x32xf32, #tpu.memory_space<vmem>>, vector<1x32xf32>
    %168 = vector.broadcast %167 : vector<1x32xf32> to vector<32x32xf32>
    %169 = arith.mulf %166, %168 : vector<32x32xf32>
    %c0_69 = arith.constant 0 : index
    %c0_70 = arith.constant 0 : index
    %170 = vector.load %arg13[%c0_69, %c0_70] : memref<1x32xf32, #tpu.memory_space<vmem>>, vector<1x32xf32>
    %171 = vector.broadcast %170 : vector<1x32xf32> to vector<32x32xf32>
    %172 = arith.addf %169, %171 : vector<32x32xf32>
    %173 = vector.shape_cast %172 : vector<32x32xf32> to vector<2x16x32xf32>
    %c0_71 = arith.constant 0 : index
    %c0_72 = arith.constant 0 : index
    %c0_73 = arith.constant 0 : index
    %174 = vector.load %arg14[%c0_71, %c0_72, %c0_73] : memref<2x16x32xf32, #tpu.memory_space<vmem>>, vector<2x16x32xf32>
    tpu.vector_store %arg14[%c0_71, %c0_72, %c0_73], %173 {strides = array<i32>} : memref<2x16x32xf32, #tpu.memory_space<vmem>>, vector<2x16x32xf32>,
    return
  }
  func.func @transform_0(%arg0: i32) -> (i32, i32, i32) {
    %c0_i32 = arith.constant 0 : i32
    %c0_i32_0 = arith.constant 0 : i32
    %c0_i32_1 = arith.constant 0 : i32
    return %arg0, %c0_i32, %c0_i32_0 : i32, i32, i32
  }
  func.func @transform_1(%arg0: i32) -> (i32, i32) {
    %c0_i32 = arith.constant 0 : i32
    %c0_i32_0 = arith.constant 0 : i32
    %c0_i32_1 = arith.constant 0 : i32
    return %c0_i32, %c0_i32_0 : i32, i32
  }
  func.func @transform_2(%arg0: i32) -> (i32, i32) {
    %c0_i32 = arith.constant 0 : i32
    %c0_i32_0 = arith.constant 0 : i32
    %c0_i32_1 = arith.constant 0 : i32
    return %c0_i32, %c0_i32_0 : i32, i32
  }
  func.func @transform_3(%arg0: i32) -> (i32, i32, i32) {
    %c0_i32 = arith.constant 0 : i32
    %c0_i32_0 = arith.constant 0 : i32
    %c0_i32_1 = arith.constant 0 : i32
    %c0_i32_2 = arith.constant 0 : i32
    return %c0_i32, %c0_i32_0, %c0_i32_1 : i32, i32, i32
  }
  func.func @transform_4(%arg0: i32) -> (i32, i32) {
    %c0_i32 = arith.constant 0 : i32
    %c0_i32_0 = arith.constant 0 : i32
    %c0_i32_1 = arith.constant 0 : i32
    return %c0_i32, %c0_i32_0 : i32, i32
  }
  func.func @transform_5(%arg0: i32) -> (i32, i32) {
    %c0_i32 = arith.constant 0 : i32
    %c0_i32_0 = arith.constant 0 : i32
    %c0_i32_1 = arith.constant 0 : i32
    return %c0_i32, %c0_i32_0 : i32, i32
  }
  func.func @transform_6(%arg0: i32) -> (i32, i32) {
    %c0_i32 = arith.constant 0 : i32
    %c0_i32_0 = arith.constant 0 : i32
    %c0_i32_1 = arith.constant 0 : i32
    return %c0_i32, %c0_i32_0 : i32, i32
  }
  func.func @transform_7(%arg0: i32) -> (i32, i32) {
    %c0_i32 = arith.constant 0 : i32
    %c0_i32_0 = arith.constant 0 : i32
    %c0_i32_1 = arith.constant 0 : i32
    return %c0_i32, %c0_i32_0 : i32, i32
  }
  func.func @transform_8(%arg0: i32) -> (i32, i32) {
    %c0_i32 = arith.constant 0 : i32
    %c0_i32_0 = arith.constant 0 : i32
    %c0_i32_1 = arith.constant 0 : i32
    return %c0_i32, %c0_i32_0 : i32, i32
  }
  func.func @transform_9(%arg0: i32) -> (i32, i32) {
    %c0_i32 = arith.constant 0 : i32
    %c0_i32_0 = arith.constant 0 : i32
    %c0_i32_1 = arith.constant 0 : i32
    return %c0_i32, %c0_i32_0 : i32, i32
  }
  func.func @transform_10(%arg0: i32) -> (i32, i32) {
    %c0_i32 = arith.constant 0 : i32
    %c0_i32_0 = arith.constant 0 : i32
    %c0_i32_1 = arith.constant 0 : i32
    return %c0_i32, %c0_i32_0 : i32, i32
  }
  func.func @transform_11(%arg0: i32) -> (i32, i32) {
    %c0_i32 = arith.constant 0 : i32
    %c0_i32_0 = arith.constant 0 : i32
    %c0_i32_1 = arith.constant 0 : i32
    return %c0_i32, %c0_i32_0 : i32, i32
  }
  func.func @transform_12(%arg0: i32) -> (i32, i32) {
    %c0_i32 = arith.constant 0 : i32
    %c0_i32_0 = arith.constant 0 : i32
    %c0_i32_1 = arith.constant 0 : i32
    return %c0_i32, %c0_i32_0 : i32, i32
  }
  func.func @transform_13(%arg0: i32) -> (i32, i32, i32) {
    %c0_i32 = arith.constant 0 : i32
    %c0_i32_0 = arith.constant 0 : i32
    %c0_i32_1 = arith.constant 0 : i32
    return %arg0, %c0_i32, %c0_i32_0 : i32, i32, i32
  }
}

</mosaic_0001>

<bundles_post_ra>
// kernel: tpu_custom_call.1
= control target key start
LH: loop header
LB: loop body
LE: loop exit
PB: predicated region body
PF: predicated region fallthrough
CT: control target
= control target key end

     0   :  { %s4263_s0 = inlined_call_operand.vmem [shape: f32[4,16,32], index: 0, kind: input, shape index: {}]   ;;  %s4264_s1 = inlined_call_operand.vmem [shape: f32[32,96], index: 1, kind: input, shape index: {}]   ;;  %s4265_s2 = inlined_call_operand.vmem [shape: f32[1,96], index: 2, kind: input, shape index: {}]   ;;  %s4266_s3 = inlined_call_operand.vmem [shape: f32[4,8,32], index: 3, kind: input, shape index: {}]   ;;  %s4267_s4 = inlined_call_operand.vmem [shape: f32[1,32], index: 4, kind: input, shape index: {}]   ;;  %s4268_s5 = inlined_call_operand.vmem [shape: f32[32,128], index: 5, kind: input, shape index: {}]   ;;  %s4269_s6 = inlined_call_operand.vmem [shape: f32[1,128], index: 6, kind: input, shape index: {}]   ;;  %s4270_s7 = inlined_call_operand.vmem [shape: f32[128,32], index: 7, kind: input, shape index: {}]   ;;  %s4271_s8 = inlined_call_operand.vmem [shape: f32[1,32], index: 8, kind: input, shape index: {}]   ;;  %s4272_s9 = inlined_call_operand.vmem [shape: f32[1,32], index: 9, kind: input, shape index: {}]   ;;  %s4273_s10 = inlined_call_operand.vmem [shape: f32[1,32], index: 10, kind: input, shape index: {}]   ;;  %s4274_s11 = inlined_call_operand.vmem [shape: f32[1,32], index: 11, kind: input, shape index: {}]   ;;  %s4275_s12 = inlined_call_operand.vmem [shape: f32[1,32], index: 12, kind: input, shape index: {}]   ;;  %s4276_s13 = inlined_call_operand.hbm [shape: f32[4,16,32], index: 13, kind: output, shape index: {}]  }
   0x1   :  { %4277 = sst [smem:[#allocation6_spill]] %s4263_s0 }
   0x2   :  { %4278 = sst [smem:[#allocation7_spill]] %s4264_s1 }
   0x3   :  { %18 = vsyncpa [#allocation3], 0 }
   0x4   :  { %20 = vsyncpa [#allocation3 + $0x1], 0  ;;  %s3756_s25 = smov 0   ;;  %s3758_s26 = smov 0  }
   0x5   :  { %s3760_s27 = smov 0   ;;  %s3762_s28 = smov 0  }
   0x6 LB: > { %s3777_s29 = sadd.s32 4294967295, %s3670_s28   ;;  %s3044_s30 = sadd.s32 4294967294, %s3670_s28   ;;  %s3670_s28 = sphi %s3762_s28, %s4288_s28   ;;  %s3666_s27 = sphi %s3760_s27, %s4287_s27   ;;  %s3662_s26 = sphi %s3758_s26, %s4286_s26   ;;  %s3658_s25 = sphi %s3756_s25, %s4285_s25  }
   0x7   : > { %s3781_s14 = sadd.s32 1, %s3670_s28   ;;  %s311_s15 = sadd.s32 1, %s3666_s27 }
   0x8   : > { %s308_s16 = ssub.s32 %s3670_s28, %s3781_s14  ;;  %p321_p0 = scmp.ne.s32.totalorder %s3666_s27, %s3662_s26 }
   0x9   : > { %p309_p1 = scmp.eq.s32.totalorder %s308_s16, 0  ;;  %p322_p2 = scmp.eq.s32.totalorder %s3777_s29, 1 }
   0xa   : > { %p327_p3 = scmp.ne.s32.totalorder %s3662_s26, %s3658_s25  ;;  %p328_p4 = scmp.eq.s32.totalorder %s3044_s30, 1 }
   0xb   : > { %s3792_s17 = scalar_select %p309_p1, %s3666_s27, %s311_s15  }
   0xc   : > { %p3794_p5 = por %p322_p2, %p321_p0  ;;  %p3798_p6 = por %p328_p4, %p327_p3 }
   0xd   : > { %4279 = sst [smem:[#allocation5_spill]] %s3792_s17  ;;  %p3047_p7 = scmp.ge.s32.totalorder %s3670_s28, 1 }
   0xe   : > { %p392_p8 = scmp.lt.s32.totalorder %s3670_s28, 3 }
  0x10   : > { %p393_p9 = pnand %p3047_p7, %p392_p8 }
  0x11   : > { %s4282_s1 = sld [smem:[#allocation7_spill]] (!%p393_p9)  ;;  %s3049_s24 = sshll.u32 (!%p393_p9), %s3777_s29, 1 }
  0x12   : > { %396 = sbr.rel (%p393_p9) target bundleno = 4352 (0x1100), region = 72  ;;  %p438_p10 = scmp.lt.s32.totalorder (!%p393_p9), %s3049_s24, 3 }
  0x13   : > { %s4283_s0 = sld [smem:[#allocation6_spill]] (!%p393_p9)  ;;  %s3672_s30 = smov (!%p393_p9), 96  }
  0x14   : > { %s3673_s15 = smov (!%p393_p9), 64   ;;  %s3674_s16 = smov (!%p393_p9), 88  }
  0x15   : > { %s3676_s21 = smov (!%p393_p9), 56   ;;  %s3677_s22 = smov (!%p393_p9), 80  }
  0x16   : > { %s3678_s17 = smov (!%p393_p9), 112  }
  0x17   : > { %v452_v0 = vld [vmem:[%s4282_s1 + $0x18] sm:$0xff]  ;;  %v451_v1 = vld [vmem:[%s4282_s1 + $0x10] sm:$0xff]  ;;  %v450_v2 = vld [vmem:[%s4282_s1 + $0x8] sm:$0xff]  ;;  %s4290_s24 = smov (!%p438_p10, %s3049_s24), 3  ;;  %vm460_vm0 = vcmask 261120   ;;  %vm564_vm1 = vcmask 64512  }
  0x18   : > { %3264 = vmatprep.subr.mxu0 %v452_v0  ;;  %v449_v3 = vld [vmem:[%s4282_s1] sm:$0xff]  ;;  %s3141_s20 = sshll.u32 %s4290_s24, 4  ;;  %vm741_vm2 = vcmask 130048   ;;  %s434_s24 = sand.u32 1, %s3662_s26  }
  0x19   : > { %3265 = vmatpush3.msra.mxu0 %v452_v0  ;;  %s3820_s23 = scalar_lea.vmem %s4283_s0, %s3141_s20  ;;  %v3052_v8 = vld [vmem:[%s4265_s2] ss:$0 sm:$0xff]  ;;  %s3675_s20 = smov 120  }
  0x1a   : > { %3266 = vmatprep.subr.mxu0 %v451_v1  ;;  %v445_v4 = vld [vmem:[%s3820_s23] sm:$0xff]  ;;  %v446_v5 = vld [vmem:[%s3820_s23 + $0x8] sm:$0xff]  ;;  %v447_v6 = vld [vmem:[%s3820_s23 + $0x10] sm:$0xff] }
  0x1b   : > { %3267 = vmatpush3.msra.mxu0 %v451_v1  ;;  %3272 = vmatprep.mubr.msk.f32.mxu0 %vm460_vm0, %v445_v4  ;;  %v448_v7 = vld [vmem:[%s3820_s23 + $0x18] sm:$0xff] }
  0x1c   : > { %3268 = vmatprep.subr.mxu0 %v450_v2 }
  0x1d   : > { %3269 = vmatpush3.msra.mxu0 %v450_v2 }
  0x1e   : > { %3270 = vmatprep.subr.mxu0 %v449_v3 }
  0x1f   : > { %3271 = vmatpush3.msra.mxu0 %v449_v3 }
  0x20   : > { %3273 = vmatmul.mubr.msk.f32.vlgmr.msra.gmra.mxu0 %vm460_vm0, %v446_v5 }
  0x21   : > { %3275 = vmatprep.mubr.msk.f32.mxu0 %vm460_vm0, %v447_v6 }
  0x24   : > { %3276 = vmatmul.mubr.msk.f32.gmra.mxu0 %vm460_vm0, %v448_v7 }
  0xe0   : > { %v3274_v9 = vpop.f32.mrf.mxu0 }
  0xe1   : > { %v3833_v10 = vadd.f32 %v3274_v9, %v3052_v8 }
  0xe2   : > { %v539_v11 = vpop.f32.mrf.mxu0 }
  0xe3   : > { %v3835_v12 = vadd.f32 %v3052_v8, %v539_v11  ;;  %562 = vrot.lane.b32.xlu0 %v3833_v10, %s3672_s30 }
  0xe4   : > { %v3277_v13 = vpop.f32.mrf.mxu0 }
  0xe5   : > { %3282 = vmatprep.mubr.msk.f32.mxu0 %vm564_vm1, %v3835_v12  ;;  %v3840_v14 = vadd.f32 %v3277_v13, %v3052_v8 }
  0xe6   : > { %v549_v15 = vpop.f32.mrf.mxu0 }
  0xe7   : > { %560 = vrot.lane.b32.xlu0 %v3835_v12, %s3672_s30  ;;  %652 = vrot.lane.b32.xlu1 %v3840_v14, %s3672_s30  ;;  %v3844_v16 = vadd.f32 %v3052_v8, %v549_v15 }
  0xeb   : > { %650 = vrot.lane.b32.xlu1 %v3844_v16, %s3672_s30  ;;  %s3682_s30 = smov 40  }
 0x155   : > { %v563_v17 = vpop.permute.xlu0 %562 }
 0x156   : > { %3278 = vmatprep.subr.msk.mxu0 %vm564_vm1, %v563_v17 }
 0x157   : > { %3279 = vmatpush3.xpose.msk.msra.mxu0 %vm564_vm1, %v563_v17 }
 0x159   : > { %v561_v18 = vpop.permute.xlu0 %560  ;;  %v653_v19 = vpop.permute.xlu1 %652 }
 0x15a   : > { %3280 = vmatprep.subr.msk.mxu0 %vm564_vm1, %v561_v18 }
 0x15b   : > { %3281 = vmatpush3.xpose.msk.msra.mxu0 %vm564_vm1, %v561_v18 }
 0x15c   : > { %3285 = vmatprep.subr.msk.mxu0 %vm564_vm1, %v653_v19 }
 0x15d   : > { %v651_v20 = vpop.permute.xlu1 %650 }
 0x15e   : > { %3283 = vmatmul.mubr.msk.f32.vlgmr.msra.gmra.mxu0 %vm564_vm1, %v3833_v10 }
 0x15f   : > { %3286 = vmatpush3.xpose.msk.msra.mxu0 %vm564_vm1, %v653_v19  ;;  %3289 = vmatprep.mubr.msk.f32.mxu0 %vm564_vm1, %v3844_v16 }
 0x160   : > { %3287 = vmatprep.subr.msk.mxu0 %vm564_vm1, %v651_v20 }
 0x163   : > { %3288 = vmatpush3.xpose.msk.msra.mxu0 %vm564_vm1, %v651_v20 }
 0x166   : > { %3290 = vmatmul.mubr.msk.f32.vlgmr.msra.gmra.mxu0 %vm564_vm1, %v3840_v14 }
 0x21e   : > { %v3284_v21 = vpop.f32.mrf.mxu0 }
 0x21f   : > { %v738_v22 = vmul.f32 0.35355338, %v3284_v21 }
 0x220   : > { %v639_v23 = vpop.f32.mrf.mxu0 }
 0x221   : > { %v737_v24 = vmul.f32 0.35355338, %v639_v23  ;;  %v745_v25 = vsel %vm741_vm2, %v738_v22, -inf }
 0x222   : > { %746 = vmax.xlane.f32.xlu1 %v745_v25 }
 0x223   : > { %v742_v26 = vsel %vm741_vm2, %v737_v24, -inf }
 0x224   : > { %743 = vmax.xlane.f32.xlu0 %v742_v26 }
 0x226   : > { %v3291_v27 = vpop.f32.mrf.mxu0 }
 0x227   : > { %v740_v30 = vmul.f32 0.35355338, %v3291_v27 }
 0x228   : > { %v728_v28 = vpop.f32.mrf.mxu0 }
 0x229   : > { %v739_v29 = vmul.f32 0.35355338, %v728_v28  ;;  %v751_v32 = vsel %vm741_vm2, %v740_v30, -inf }
 0x22b   : > { %v748_v31 = vsel %vm741_vm2, %v739_v29, -inf }
 0x22c   : > { %749 = vmax.xlane.f32.xlu0 %v748_v31 }
 0x230   : > { %752 = vmax.xlane.f32.xlu0 %v751_v32 }
 0x233   : > { %788 = vrot.lane.b32.xlu1 %v3833_v10, %s3673_s15 }
 0x237   : > { %875 = vrot.lane.b32.xlu1 %v3840_v14, %s3673_s15 }
 0x23b   : > { %967 = vrot.lane.b32.xlu1 %v3833_v10, %s3674_s16 }
 0x23f   : > { %965 = vrot.lane.b32.xlu1 %v3835_v12, %s3674_s16 }
 0x243   : > { %961 = vrot.lane.b32.xlu1 %v3835_v12, %s3675_s20 }
 0x246   : > { %786 = vrot.lane.b32.xlu0 %v3835_v12, %s3673_s15 }
 0x24a   : > { %873 = vrot.lane.b32.xlu0 %v3844_v16, %s3673_s15 }
 0x24e   : > { %1058 = vrot.lane.b32.xlu0 %v3840_v14, %s3674_s16 }
 0x2ab   : > { %v747_v33 = vpop.xlane.xlu1 %746 }
 0x2ac   : > { %v755_v34 = vsub.f32 %v738_v22, %v747_v33 }
 0x2ad   : > { %v744_v35 = vpop.xlane.xlu0 %743 }
 0x2ae   : > { %v760_v36 = vmul.f32 1.442695, %v755_v34  ;;  %v754_v37 = vsub.f32 %v737_v24, %v744_v35 }
 0x2af   : > { %v789_v38 = vpop.permute.xlu1 %788 }
 0x2b0   : > { %3526 = vpow2.f32 %v760_v36  ;;  %v758_v39 = vmul.f32 1.442695, %v754_v37  ;;  %3292 = vmatprep.subr.mxu0 %v789_v38 }
 0x2b1   : > { %3293 = vmatpush3.msra.mxu0 %v789_v38 }
 0x2b2   : > { %3528 = vpow2.f32 %v758_v39 }
 0x2b3   : > { %v876_v40 = vpop.permute.xlu1 %875 }
 0x2b4   : > { %3299 = vmatprep.subr.mxu1 %v876_v40 }
 0x2b5   : > { %3300 = vmatpush3.msra.mxu1 %v876_v40  ;;  %v750_v41 = vpop.xlane.xlu0 %749 }
 0x2b6   : > { %v756_v55 = vsub.f32 %v739_v29, %v750_v41 }
 0x2b7   : > { %v968_v49 = vpop.permute.xlu1 %967 }
 0x2b8   : > { %v762_v56 = vmul.f32 1.442695, %v756_v55 }
 0x2b9   : > { %v753_v42 = vpop.xlane.xlu0 %752 }
 0x2ba   : > { %v757_v43 = vsub.f32 %v740_v30, %v753_v42 }
 0x2bb   : > { %v966_v59 = vpop.permute.xlu1 %965 }
 0x2bc   : > { %v764_v44 = vmul.f32 1.442695, %v757_v43 }
 0x2bd   : > { %v3527_v45 = vpop.eup %3526  ;;  %v787_v46 = vpop.permute.xlu0 %786 }
 0x2be   : > { %3530 = vpow2.f32 %v764_v44  ;;  %3294 = vmatprep.subr.mxu0 %v787_v46  ;;  %v769_v47 = vsel %vm741_vm2, %v3527_v45, 0.0 }
 0x2bf   : > { %v3529_v48 = vpop.eup %3528  ;;  %770 = vadd.xlane.f32.xlu0 %v769_v47  ;;  %3295 = vmatpush3.msra.mxu0 %v787_v46  ;;  %3532 = vpow2.f32 %v762_v56  ;;  %v962_v60 = vpop.permute.xlu1 %961 }
 0x2c0   : > { %3306 = vmatprep.subr.msk.mxu0 %vm564_vm1, %v968_v49  ;;  %v766_v50 = vsel %vm741_vm2, %v3529_v48, 0.0 }
 0x2c1   : > { %767 = vadd.xlane.f32.xlu1 %v766_v50  ;;  %v874_v51 = vpop.permute.xlu0 %873 }
 0x2c2   : > { %3301 = vmatprep.subr.mxu1 %v874_v51 }
 0x2c3   : > { %3302 = vmatpush3.msra.mxu1 %v874_v51 }
 0x2c5   : > { %v1059_v52 = vpop.permute.xlu0 %1058 }
 0x2c6   : > { %3313 = vmatprep.subr.msk.mxu1 %vm564_vm1, %v1059_v52 }
 0x2cb   : > { %v3531_v53 = vpop.eup %3530 }
 0x2cc   : > { %v775_v54 = vsel %vm741_vm2, %v3531_v53, 0.0  ;;  %v3533_v57 = vpop.eup %3532 }
 0x2cd   : > { %776 = vadd.xlane.f32.xlu0 %v775_v54  ;;  %v772_v58 = vsel %vm741_vm2, %v3533_v57, 0.0 }
 0x2d2   : > { %1056 = vrot.lane.b32.xlu1 %v3844_v16, %s3674_s16  ;;  %s3048_s16 = sshll.u32 %s434_s24, 5 }
 0x2e3   : > { %963 = vrot.lane.b32.xlu0 %v3833_v10, %s3675_s20 }
 0x2e7   : > { %1052 = vrot.lane.b32.xlu0 %v3844_v16, %s3675_s20 }
 0x2f6   : > { %773 = vadd.xlane.f32.xlu1 %v772_v58 }
 0x307   : > { %1054 = vrot.lane.b32.xlu1 %v3840_v14, %s3675_s20  ;;  %s3679_s20 = smov 48  }
 0x348   : > { %v771_v61 = vpop.xlane.xlu0 %770 }
 0x349   : > { %3534 = vrcp.f32 %v771_v61 }
 0x34a   : > { %v768_v62 = vpop.xlane.xlu1 %767 }
 0x34b   : > { %3536 = vrcp.f32 %v768_v62  ;;  %v960_v62 = vld [vmem:[%s4266_s3] sm:$0xff] }
 0x34e   : > { %v1057_v5 = vpop.permute.xlu1 %1056 }
 0x356   : > { %v3535_v63 = vpop.eup %3534  ;;  %v777_v3 = vpop.xlane.xlu0 %776 }
 0x357   : > { %v783_v2 = vmul.f32 %v3535_v63, %v3527_v45  ;;  %3538 = vrcp.f32 %v777_v3 }
 0x358   : > { %v3537_v0 = vpop.eup %3536 }
 0x359   : > { %v782_v1 = vmul.f32 %v3537_v0, %v3529_v48 }
 0x35a   : > { %v964_v4 = vpop.permute.xlu0 %963 }
 0x35b   : > { %3296 = vmatprep.mubr.msk.f32.mxu0 %vm741_vm2, %v782_v1  ;;  %v3081_v1 = vld [vmem:[%s4266_s3 + $0x8] sm:$0xff] }
 0x35c   : > { %3297 = vmatmul.mubr.msk.f32.vlgmr.msra.gmra.mxu0 %vm741_vm2, %v783_v2 }
 0x35d   : > { %3307 = vmatpush3.xpose.msk.msra.mxu0 %vm564_vm1, %v968_v49  ;;  %3310 = vmatprep.mubr.msk.f32.mxu0 %vm564_vm1, %v962_v60 }
 0x35e   : > { %3308 = vmatprep.subr.msk.mxu0 %vm564_vm1, %v966_v59  ;;  %v1053_v13 = vpop.permute.xlu0 %1052 }
 0x361   : > { %3309 = vmatpush3.xpose.msk.msra.mxu0 %vm564_vm1, %v966_v59 }
 0x364   : > { %3311 = vmatmul.mubr.msk.f32.vlgmr.msra.gmra.mxu0 %vm564_vm1, %v964_v4  ;;  %v3539_v7 = vpop.eup %3538 }
 0x365   : > { %v785_v11 = vmul.f32 %v3539_v7, %v3531_v53 }
 0x37f   : > { %v774_v6 = vpop.xlane.xlu1 %773 }
 0x380   : > { %3540 = vrcp.f32 %v774_v6 }
 0x383   : > { %v1055_v15 = vpop.permute.xlu1 %1054 }
 0x38d   : > { %v3541_v8 = vpop.eup %3540 }
 0x38e   : > { %v784_v9 = vmul.f32 %v3541_v8, %v3533_v57 }
 0x390   : > { %3303 = vmatprep.mubr.msk.f32.mxu1 %vm741_vm2, %v784_v9 }
 0x391   : > { %3304 = vmatmul.mubr.msk.f32.vlgmr.msra.gmra.mxu1 %vm741_vm2, %v785_v11 }
 0x392   : > { %3314 = vmatpush3.xpose.msk.msra.mxu1 %vm564_vm1, %v1059_v52  ;;  %3317 = vmatprep.mubr.msk.f32.mxu1 %vm564_vm1, %v1053_v13 }
 0x393   : > { %3315 = vmatprep.subr.msk.mxu1 %vm564_vm1, %v1057_v5 }
 0x396   : > { %3316 = vmatpush3.xpose.msk.msra.mxu1 %vm564_vm1, %v1057_v5 }
 0x399   : > { %3318 = vmatmul.mubr.msk.f32.vlgmr.msra.gmra.mxu1 %vm564_vm1, %v1055_v15 }
 0x41c   : > { %v3905_v17 = vpop.f32.mrf.mxu0 }
 0x41e   : > { %v3907_v18 = vpop.f32.mrf.mxu0 }
 0x424   : > { %v3312_v19 = vpop.f32.mrf.mxu0 }
 0x425   : > { %v1144_v20 = vmul.f32 0.35355338, %v3312_v19 }
 0x426   : > { %v1043_v21 = vpop.f32.mrf.mxu0 }
 0x427   : > { %v1143_v22 = vmul.f32 0.35355338, %v1043_v21  ;;  %v1150_v23 = vsel %vm741_vm2, %v1144_v20, -inf }
 0x428   : > { %1151 = vmax.xlane.f32.xlu1 %v1150_v23 }
 0x429   : > { %v1147_v24 = vsel %vm741_vm2, %v1143_v22, -inf }
 0x42a   : > { %1148 = vmax.xlane.f32.xlu0 %v1147_v24 }
 0x439   : > { %1193 = vrot.lane.b32.xlu1 %v3833_v10, %s3676_s21 }
 0x451   : > { %v3913_v25 = vpop.f32.mrf.mxu1 }
 0x453   : > { %v3915_v26 = vpop.f32.mrf.mxu1 }
 0x459   : > { %v3319_v27 = vpop.f32.mrf.mxu1 }
 0x45a   : > { %v1146_v30 = vmul.f32 0.35355338, %v3319_v27 }
 0x45b   : > { %v1134_v28 = vpop.f32.mrf.mxu1 }
 0x45c   : > { %v1145_v29 = vmul.f32 0.35355338, %v1134_v28  ;;  %v1156_v32 = vsel %vm741_vm2, %v1146_v30, -inf }
 0x45e   : > { %v1153_v31 = vsel %vm741_vm2, %v1145_v29, -inf }
 0x45f   : > { %1154 = vmax.xlane.f32.xlu0 %v1153_v31 }
 0x463   : > { %1157 = vmax.xlane.f32.xlu0 %v1156_v32 }
 0x4b1   : > { %v1152_v33 = vpop.xlane.xlu1 %1151 }
 0x4b2   : > { %v1160_v34 = vsub.f32 %v1144_v20, %v1152_v33 }
 0x4b3   : > { %v1149_v35 = vpop.xlane.xlu0 %1148 }
 0x4b4   : > { %v1165_v36 = vmul.f32 1.442695, %v1160_v34  ;;  %v1159_v37 = vsub.f32 %v1143_v22, %v1149_v35 }
 0x4b5   : > { %v1194_v38 = vpop.permute.xlu1 %1193 }
 0x4b6   : > { %3542 = vpow2.f32 %v1165_v36  ;;  %v1163_v39 = vmul.f32 1.442695, %v1159_v37  ;;  %3320 = vmatprep.subr.mxu0 %v1194_v38 }
 0x4b7   : > { %3321 = vmatpush3.msra.mxu0 %v1194_v38 }
 0x4b8   : > { %3544 = vpow2.f32 %v1163_v39 }
 0x4c3   : > { %v3543_v40 = vpop.eup %3542 }
 0x4c4   : > { %v1174_v41 = vsel %vm741_vm2, %v3543_v40, 0.0 }
 0x4c5   : > { %v3545_v42 = vpop.eup %3544  ;;  %1175 = vadd.xlane.f32.xlu0 %v1174_v41 }
 0x4c6   : > { %v1171_v43 = vsel %vm741_vm2, %v3545_v42, 0.0 }
 0x4c7   : > { %1172 = vadd.xlane.f32.xlu1 %v1171_v43 }
 0x4d8   : > { %1280 = vrot.lane.b32.xlu1 %v3840_v14, %s3676_s21 }
 0x4e8   : > { %v1155_v44 = vpop.xlane.xlu0 %1154 }
 0x4e9   : > { %v1161_v45 = vsub.f32 %v1145_v29, %v1155_v44 }
 0x4eb   : > { %v1167_v46 = vmul.f32 1.442695, %v1161_v45 }
 0x4ec   : > { %v1158_v47 = vpop.xlane.xlu0 %1157 }
 0x4ed   : > { %3546 = vpow2.f32 %v1167_v46  ;;  %v1162_v48 = vsub.f32 %v1146_v30, %v1158_v47 }
 0x4ef   : > { %v1169_v49 = vmul.f32 1.442695, %v1162_v48 }
 0x4f1   : > { %3548 = vpow2.f32 %v1169_v49 }
 0x4fa   : > { %v3547_v50 = vpop.eup %3546 }
 0x4fb   : > { %v1177_v51 = vsel %vm741_vm2, %v3547_v50, 0.0 }
 0x4fc   : > { %1178 = vadd.xlane.f32.xlu1 %v1177_v51 }
 0x4fe   : > { %v3549_v52 = vpop.eup %3548 }
 0x4ff   : > { %v1180_v53 = vsel %vm741_vm2, %v3549_v52, 0.0 }
 0x500   : > { %1181 = vadd.xlane.f32.xlu0 %v1180_v53 }
 0x50d   : > { %1278 = vrot.lane.b32.xlu1 %v3844_v16, %s3676_s21 }
 0x511   : > { %1565 = vrot.lane.b32.xlu1 %v3835_v12, %s3677_s22 }
 0x515   : > { %1561 = vrot.lane.b32.xlu1 %v3835_v12, %s3678_s17 }
 0x516   : > { %1191 = vrot.lane.b32.xlu0 %v3835_v12, %s3676_s21  ;;  %s3680_s21 = smov 72  }
 0x519   : > { %1656 = vrot.lane.b32.xlu1 %v3844_v16, %s3677_s22 }
 0x51a   : > { %1567 = vrot.lane.b32.xlu0 %v3833_v10, %s3677_s22 }
 0x51d   : > { %1654 = vrot.lane.b32.xlu1 %v3840_v14, %s3678_s17 }
 0x51e   : > { %1658 = vrot.lane.b32.xlu0 %v3840_v14, %s3677_s22  ;;  %s3681_s22 = smov 104  }
 0x522   : > { %1563 = vrot.lane.b32.xlu0 %v3833_v10, %s3678_s17 }
 0x526   : > { %1652 = vrot.lane.b32.xlu0 %v3844_v16, %s3678_s17 }
 0x54e   : > { %v1176_v58 = vpop.xlane.xlu0 %1175 }
 0x550   : > { %v1173_v54 = vpop.xlane.xlu1 %1172 }
 0x551   : > { %3550 = vrcp.f32 %v1173_v54 }
 0x552   : > { %3552 = vrcp.f32 %v1176_v58 }
 0x554   : > { %v1281_v55 = vpop.permute.xlu1 %1280 }
 0x555   : > { %3327 = vmatprep.subr.mxu1 %v1281_v55 }
 0x556   : > { %3328 = vmatpush3.msra.mxu1 %v1281_v55 }
 0x55e   : > { %v3551_v56 = vpop.eup %3550 }
 0x55f   : > { %v1187_v57 = vmul.f32 %v3551_v56, %v3545_v42  ;;  %v3553_v63 = vpop.eup %3552 }
 0x560   : > { %v1188_v2 = vmul.f32 %v3553_v63, %v3543_v40 }
 0x561   : > { %3324 = vmatprep.mubr.msk.f32.mxu0 %vm741_vm2, %v1187_v57 }
 0x585   : > { %v1179_v59 = vpop.xlane.xlu1 %1178 }
 0x586   : > { %3554 = vrcp.f32 %v1179_v59 }
 0x589   : > { %v1279_v60 = vpop.permute.xlu1 %1278  ;;  %v1182_v61 = vpop.xlane.xlu0 %1181 }
 0x58a   : > { %3556 = vrcp.f32 %v1182_v61  ;;  %3329 = vmatprep.subr.mxu1 %v1279_v60 }
 0x58b   : > { %3330 = vmatpush3.msra.mxu1 %v1279_v60 }
 0x58c   : > { %3342 = vmatprep.subr.mxu1 %v960_v62 }
 0x58d   : > { %v1192_v0 = vpop.permute.xlu0 %1191  ;;  %v1566_v5 = vpop.permute.xlu1 %1565 }
 0x58e   : > { %3322 = vmatprep.subr.mxu0 %v1192_v0 }
 0x58f   : > { %3323 = vmatpush3.msra.mxu0 %v1192_v0 }
 0x590   : > { %3325 = vmatmul.mubr.msk.f32.vlgmr.msra.gmra.mxu0 %vm741_vm2, %v1188_v2  ;;  %3334 = vmatprep.subr.mxu0 %v3081_v1 }
 0x591   : > { %3335 = vmatpush3.msra.mxu0 %v3081_v1  ;;  %v1568_v3 = vpop.permute.xlu0 %1567  ;;  %v1562_v11 = vpop.permute.xlu1 %1561 }
 0x592   : > { %3350 = vmatprep.subr.msk.mxu0 %vm564_vm1, %v1568_v3 }
 0x593   : > { %v3555_v4 = vpop.eup %3554 }
 0x594   : > { %v1189_v6 = vmul.f32 %v3555_v4, %v3547_v50 }
 0x595   : > { %v1659_v7 = vpop.permute.xlu0 %1658  ;;  %v1657_v15 = vpop.permute.xlu1 %1656 }
 0x596   : > { %3331 = vmatprep.mubr.msk.f32.mxu1 %vm741_vm2, %v1189_v6 }
 0x597   : > { %v3557_v8 = vpop.eup %3556 }
 0x598   : > { %v1190_v9 = vmul.f32 %v3557_v8, %v3549_v52 }
 0x599   : > { %v1564_v13 = vpop.permute.xlu0 %1563 }
 0x59a   : > { %3332 = vmatmul.mubr.msk.f32.vlgmr.msra.gmra.mxu1 %vm741_vm2, %v1190_v9 }
 0x59b   : > { %3343 = vmatpush3.msra.mxu1 %v960_v62  ;;  %3344 = vmatprep.mubr.msk.f32.mxu1 %vm564_vm1, %v3907_v18  ;;  %v1655_v18 = vpop.permute.xlu1 %1654 }
 0x59c   : > { %3357 = vmatprep.subr.msk.mxu1 %vm564_vm1, %v1659_v7 }
 0x59d   : > { %v1653_v19 = vpop.permute.xlu0 %1652 }
 0x59e   : > { %3345 = vmatmul.mubr.msk.f32.vlgmr.msra.gmra.mxu1 %vm564_vm1, %v3905_v17 }
 0x59f   : > { %3358 = vmatpush3.xpose.msk.msra.mxu1 %vm564_vm1, %v1659_v7  ;;  %3347 = vmatprep.mubr.msk.f32.mxu1 %vm564_vm1, %v3915_v26 }
 0x5a0   : > { %3359 = vmatprep.subr.msk.mxu1 %vm564_vm1, %v1657_v15 }
 0x5a2   : > { %3348 = vmatmul.mubr.msk.f32.gmra.mxu1 %vm564_vm1, %v3913_v25 }
 0x5a3   : > { %3360 = vmatpush3.xpose.msk.msra.mxu1 %vm564_vm1, %v1657_v15  ;;  %3361 = vmatprep.mubr.msk.f32.mxu1 %vm564_vm1, %v1653_v19 }
 0x5a6   : > { %3362 = vmatmul.mubr.msk.f32.vlgmr.msra.gmra.mxu1 %vm564_vm1, %v1655_v18 }
 0x650   : > { %v3326_v17 = vpop.f32.mrf.mxu0 }
 0x652   : > { %v1269_v20 = vpop.f32.mrf.mxu0 }
 0x653   : > { %3336 = vmatprep.mubr.msk.f32.mxu0 %vm564_vm1, %v1269_v20 }
 0x654   : > { %3337 = vmatmul.mubr.msk.f32.vlgmr.msra.gmra.mxu0 %vm564_vm1, %v3326_v17 }
 0x655   : > { %3351 = vmatpush3.xpose.msk.msra.mxu0 %vm564_vm1, %v1568_v3 }
 0x656   : > { %3352 = vmatprep.subr.msk.mxu0 %vm564_vm1, %v1566_v5 }
 0x659   : > { %3353 = vmatpush3.xpose.msk.msra.mxu0 %vm564_vm1, %v1566_v5  ;;  %v3102_v5 = vld [vmem:[%s4266_s3 + $0x10] sm:$0xff] }
 0x65a   : > { %v3333_v21 = vpop.f32.mrf.mxu1 }
 0x65c   : > { %v1356_v22 = vpop.f32.mrf.mxu1 }
 0x65d   : > { %3339 = vmatprep.mubr.msk.f32.mxu0 %vm564_vm1, %v1356_v22 }
 0x65e   : > { %3340 = vmatmul.mubr.msk.f32.gmra.mxu0 %vm564_vm1, %v3333_v21  ;;  %v3971_v23 = vpop.f32.mrf.mxu1 }
 0x65f   : > { %3354 = vmatprep.mubr.msk.f32.mxu0 %vm564_vm1, %v1562_v11 }
 0x660   : > { %v3973_v24 = vpop.f32.mrf.mxu1 }
 0x662   : > { %3355 = vmatmul.mubr.msk.f32.vlgmr.msra.gmra.mxu0 %vm564_vm1, %v1564_v13  ;;  %v3975_v25 = vpop.f32.mrf.mxu1 }
 0x664   : > { %v3979_v27 = vpop.f32.mrf.mxu1 }
 0x666   : > { %v3363_v30 = vpop.f32.mrf.mxu1 }
 0x667   : > { %v1746_v40 = vmul.f32 0.35355338, %v3363_v30 }
 0x668   : > { %v1734_v34 = vpop.f32.mrf.mxu1 }
 0x669   : > { %v1745_v38 = vmul.f32 0.35355338, %v1734_v34  ;;  %v1756_v42 = vsel %vm741_vm2, %v1746_v40, -inf }
 0x66b   : > { %v1753_v41 = vsel %vm741_vm2, %v1745_v38, -inf }
 0x714   : > { %v3977_v26 = vpop.f32.mrf.mxu0 }
 0x716   : > { %v3981_v28 = vpop.f32.mrf.mxu0 }
 0x71e   : > { %v3983_v29 = vpop.f32.mrf.mxu0 }
 0x720   : > { %v3985_v31 = vpop.f32.mrf.mxu0 }
 0x722   : > { %v3356_v32 = vpop.f32.mrf.mxu0 }
 0x723   : > { %v1744_v33 = vmul.f32 0.35355338, %v3356_v32 }
 0x724   : > { %v1643_v35 = vpop.f32.mrf.mxu0 }
 0x725   : > { %v1743_v36 = vmul.f32 0.35355338, %v1643_v35  ;;  %v1750_v37 = vsel %vm741_vm2, %v1744_v33, -inf }
 0x726   : > { %1751 = vmax.xlane.f32.xlu1 %v1750_v37 }
 0x727   : > { %v1747_v39 = vsel %vm741_vm2, %v1743_v36, -inf }
 0x728   : > { %1748 = vmax.xlane.f32.xlu0 %v1747_v39 }
 0x72c   : > { %1754 = vmax.xlane.f32.xlu0 %v1753_v41 }
 0x730   : > { %1757 = vmax.xlane.f32.xlu0 %v1756_v42 }
 0x7af   : > { %v1752_v44 = vpop.xlane.xlu1 %1751 }
 0x7b0   : > { %v1760_v47 = vsub.f32 %v1744_v33, %v1752_v44 }
 0x7b1   : > { %v1749_v43 = vpop.xlane.xlu0 %1748 }
 0x7b2   : > { %v1765_v51 = vmul.f32 1.442695, %v1760_v47  ;;  %v1759_v59 = vsub.f32 %v1743_v36, %v1749_v43 }
 0x7b4   : > { %v1763_v60 = vmul.f32 1.442695, %v1759_v59  ;;  %v1558_v59 = vadd.f32 %v3975_v25, %v3983_v29 }
 0x7b5   : > { %v1755_v45 = vpop.xlane.xlu0 %1754 }
 0x7b6   : > { %v1761_v46 = vsub.f32 %v1745_v38, %v1755_v45 }
 0x7b8   : > { %v1767_v48 = vmul.f32 1.442695, %v1761_v46 }
 0x7b9   : > { %v1758_v49 = vpop.xlane.xlu0 %1757 }
 0x7ba   : > { %3558 = vpow2.f32 %v1767_v48  ;;  %v1762_v50 = vsub.f32 %v1746_v40, %v1758_v49 }
 0x7bc   : > { %v1769_v52 = vmul.f32 1.442695, %v1762_v50 }
 0x7be   : > { %3560 = vpow2.f32 %v1769_v52 }
 0x7bf   : > { %3562 = vpow2.f32 %v1765_v51 }
 0x7c0   : > { %3564 = vpow2.f32 %v1763_v60 }
 0x7c7   : > { %v3559_v53 = vpop.eup %3558 }
 0x7c8   : > { %v1777_v54 = vsel %vm741_vm2, %v3559_v53, 0.0 }
 0x7c9   : > { %1778 = vadd.xlane.f32.xlu1 %v1777_v54 }
 0x7cb   : > { %v3561_v55 = vpop.eup %3560 }
 0x7cc   : > { %v1780_v56 = vsel %vm741_vm2, %v3561_v55, 0.0  ;;  %v3993_v57 = vpop.eup %3562 }
 0x7cd   : > { %1781 = vadd.xlane.f32.xlu0 %v1780_v56  ;;  %v1774_v58 = vsel %vm741_vm2, %v3993_v57, 0.0  ;;  %v3565_v61 = vpop.eup %3564 }
 0x7ce   : > { %v1771_v62 = vsel %vm741_vm2, %v3565_v61, 0.0 }
 0x7d1   : > { %1775 = vadd.xlane.f32.xlu0 %v1774_v58 }
 0x7da   : > { %1793 = vrot.lane.b32.xlu1 %v3833_v10, %s3679_s20 }
 0x7de   : > { %1880 = vrot.lane.b32.xlu1 %v3840_v14, %s3679_s20 }
 0x7e7   : > { %1791 = vrot.lane.b32.xlu0 %v3835_v12, %s3679_s20 }
 0x7eb   : > { %2074 = vrot.lane.b32.xlu0 %v3833_v10, %s3680_s21 }
 0x7ef   : > { %2165 = vrot.lane.b32.xlu0 %v3840_v14, %s3680_s21 }
 0x7f3   : > { %2070 = vrot.lane.b32.xlu0 %v3833_v10, %s3681_s22 }
 0x7f7   : > { %2159 = vrot.lane.b32.xlu0 %v3844_v16, %s3681_s22 }
 0x802   : > { %1772 = vadd.xlane.f32.xlu1 %v1771_v62 }
 0x813   : > { %1878 = vrot.lane.b32.xlu1 %v3844_v16, %s3679_s20 }
 0x817   : > { %2072 = vrot.lane.b32.xlu1 %v3835_v12, %s3680_s21 }
 0x81b   : > { %2068 = vrot.lane.b32.xlu1 %v3835_v12, %s3681_s22 }
 0x81f   : > { %2163 = vrot.lane.b32.xlu1 %v3844_v16, %s3680_s21  ;;  %s3683_s21 = smov [#allocation2]  }
 0x823   : > { %2161 = vrot.lane.b32.xlu1 %v3840_v14, %s3681_s22  ;;  %s3143_s22 = sshll.u32 %s3777_s29, 9  ;;  %s4223_s29 = scalar_lea.sflag [#allocation3], %s434_s24 }
 0x824   : > { %s4215_s20 = scalar_lea.hbm %s4276_s13, %s3143_s22  ;;  %s3614_s22 = sshll.u32 %s3683_s21, 4  ;;  %s3615_s22 = int_to_ptr.vmem [resolvable:$false] %s3614_s22 }
 0x852   : > { %v1779_v63 = vpop.xlane.xlu1 %1778 }
 0x853   : > { %3566 = vrcp.f32 %v1779_v63 }
 0x856   : > { %v1794_v0 = vpop.permute.xlu1 %1793  ;;  %v1782_v1 = vpop.xlane.xlu0 %1781 }
 0x857   : > { %3364 = vmatprep.subr.mxu0 %v1794_v0  ;;  %3568 = vrcp.f32 %v1782_v1 }
 0x858   : > { %3365 = vmatpush3.msra.mxu0 %v1794_v0 }
 0x85a   : > { %v1881_v2 = vpop.permute.xlu1 %1880  ;;  %v1776_v3 = vpop.xlane.xlu0 %1775 }
 0x85b   : > { %3371 = vmatprep.subr.mxu1 %v1881_v2  ;;  %3570 = vrcp.f32 %v1776_v3 }
 0x85c   : > { %3372 = vmatpush3.msra.mxu1 %v1881_v2 }
 0x85e   : > { %v1792_v4 = vpop.permute.xlu0 %1791 }
 0x85f   : > { %3366 = vmatprep.subr.mxu0 %v1792_v4 }
 0x860   : > { %v3567_v6 = vpop.eup %3566  ;;  %3367 = vmatpush3.msra.mxu0 %v1792_v4 }
 0x861   : > { %v1789_v7 = vmul.f32 %v3567_v6, %v3559_v53  ;;  %3378 = vmatprep.subr.mxu0 %v3102_v5  ;;  %v1548_v53 = vadd.f32 %v3971_v23, %v3977_v26 }
 0x862   : > { %v2075_v11 = vpop.permute.xlu0 %2074 }
 0x863   : > { %3375 = vmatprep.mubr.msk.f32.mxu1 %vm741_vm2, %v1789_v7 }
 0x864   : > { %v3569_v9 = vpop.eup %3568 }
 0x865   : > { %v1790_v15 = vmul.f32 %v3569_v9, %v3561_v55  ;;  %v1543_v55 = vadd.f32 %v3973_v24, %v3981_v28 }
 0x866   : > { %v2166_v19 = vpop.permute.xlu0 %2165 }
 0x868   : > { %v3571_v20 = vpop.eup %3570 }
 0x869   : > { %v1788_v32 = vmul.f32 %v3571_v20, %v3993_v57 }
 0x86a   : > { %v2071_v22 = vpop.permute.xlu0 %2070 }
 0x86e   : > { %v2160_v44 = vpop.permute.xlu0 %2159 }
 0x88b   : > { %v1773_v8 = vpop.xlane.xlu1 %1772 }
 0x88c   : > { %3572 = vrcp.f32 %v1773_v8 }
 0x88f   : > { %v1879_v13 = vpop.permute.xlu1 %1878 }
 0x890   : > { %3373 = vmatprep.subr.mxu1 %v1879_v13 }
 0x891   : > { %3374 = vmatpush3.msra.mxu1 %v1879_v13 }
 0x892   : > { %3376 = vmatmul.mubr.msk.f32.vlgmr.msra.gmra.mxu1 %vm741_vm2, %v1790_v15  ;;  %3386 = vmatprep.subr.msk.mxu1 %vm564_vm1, %v2075_v11 }
 0x893   : > { %v2073_v18 = vpop.permute.xlu1 %2072  ;;  %3387 = vmatpush3.xpose.msk.msra.mxu1 %vm564_vm1, %v2075_v11 }
 0x894   : > { %3388 = vmatprep.subr.msk.mxu1 %vm564_vm1, %v2073_v18 }
 0x897   : > { %v2069_v17 = vpop.permute.xlu1 %2068  ;;  %3389 = vmatpush3.xpose.msk.msra.mxu1 %vm564_vm1, %v2073_v18 }
 0x898   : > { %3390 = vmatprep.mubr.msk.f32.mxu1 %vm564_vm1, %v2069_v17 }
 0x899   : > { %v3573_v21 = vpop.eup %3572 }
 0x89a   : > { %3391 = vmatmul.mubr.msk.f32.vlgmr.msra.gmra.mxu1 %vm564_vm1, %v2071_v22  ;;  %v1787_v30 = vmul.f32 %v3573_v21, %v3565_v61 }
 0x89b   : > { %v2164_v43 = vpop.permute.xlu1 %2163 }
 0x89c   : > { %3368 = vmatprep.mubr.msk.f32.mxu0 %vm741_vm2, %v1787_v30 }
 0x89d   : > { %3369 = vmatmul.mubr.msk.f32.vlgmr.msra.gmra.mxu0 %vm741_vm2, %v1788_v32 }
 0x89e   : > { %3379 = vmatpush3.msra.mxu0 %v3102_v5 }
 0x89f   : > { %3393 = vmatprep.subr.msk.mxu0 %vm564_vm1, %v2166_v19  ;;  %v2162_v45 = vpop.permute.xlu1 %2161 }
 0x952   : > { %v3377_v33 = vpop.f32.mrf.mxu1 }
 0x954   : > { %v1956_v34 = vpop.f32.mrf.mxu1 }
 0x95a   : > { %v3392_v35 = vpop.f32.mrf.mxu1 }
 0x95b   : > { %v2251_v36 = vmul.f32 0.35355338, %v3392_v35 }
 0x95c   : > { %v2150_v37 = vpop.f32.mrf.mxu1 }
 0x95d   : > { %v2250_v38 = vmul.f32 0.35355338, %v2150_v37  ;;  %v3370_v39 = vpop.f32.mrf.mxu0  ;;  %v2257_v40 = vsel %vm741_vm2, %v2251_v36, -inf }
 0x95e   : > { %2258 = vmax.xlane.f32.xlu1 %v2257_v40 }
 0x95f   : > { %v1869_v41 = vpop.f32.mrf.mxu0  ;;  %v2254_v42 = vsel %vm741_vm2, %v2250_v38, -inf }
 0x960   : > { %3380 = vmatprep.mubr.msk.f32.mxu0 %vm564_vm1, %v1869_v41  ;;  %2255 = vmax.xlane.f32.xlu0 %v2254_v42  ;;  %v3124_v42 = vld [vmem:[%s4267_s4] ss:$0 sm:$0xff] }
 0x961   : > { %3381 = vmatmul.mubr.msk.f32.vlgmr.msra.gmra.mxu0 %vm564_vm1, %v3370_v39 }
 0x962   : > { %3394 = vmatpush3.xpose.msk.msra.mxu0 %vm564_vm1, %v2166_v19  ;;  %3383 = vmatprep.mubr.msk.f32.mxu0 %vm564_vm1, %v1956_v34 }
 0x963   : > { %3395 = vmatprep.subr.msk.mxu0 %vm564_vm1, %v2164_v43 }
 0x965   : > { %3384 = vmatmul.mubr.msk.f32.gmra.mxu0 %vm564_vm1, %v3377_v33 }
 0x966   : > { %3396 = vmatpush3.xpose.msk.msra.mxu0 %vm564_vm1, %v2164_v43  ;;  %3397 = vmatprep.mubr.msk.f32.mxu0 %vm564_vm1, %v2160_v44 }
 0x969   : > { %3398 = vmatmul.mubr.msk.f32.vlgmr.msra.gmra.mxu0 %vm564_vm1, %v2162_v45 }
 0x9e7   : > { %v2259_v51 = vpop.xlane.xlu1 %2258 }
 0x9e8   : > { %v2267_v52 = vsub.f32 %v2251_v36, %v2259_v51  ;;  %v3119_v36 = vld [vmem:[%s4266_s3 + $0x18] sm:$0xff]  ;;  %v3607_v51 = vld [vmem:[%s3820_s23] sm:$0xff] }
 0x9e9   : > { %v2256_v46 = vpop.xlane.xlu0 %2255 }
 0x9ea   : > { %v2266_v47 = vsub.f32 %v2250_v38, %v2256_v46  ;;  %v2272_v56 = vmul.f32 1.442695, %v2267_v52 }
 0x9ec   : > { %v2270_v48 = vmul.f32 1.442695, %v2266_v47 }
 0x9ee   : > { %3574 = vpow2.f32 %v2270_v48  ;;  %v3606_v48 = vld [vmem:[%s3820_s23 + $0x8] sm:$0xff] }
 0x9ef   : > { %3576 = vpow2.f32 %v2272_v56 }
 0x9fb   : > { %v3575_v49 = vpop.eup %3574 }
 0x9fc   : > { %v2278_v50 = vsel %vm741_vm2, %v3575_v49, 0.0  ;;  %v3577_v29 = vpop.eup %3576 }
 0x9fd   : > { %2279 = vadd.xlane.f32.xlu1 %v2278_v50  ;;  %v2281_v1 = vsel %vm741_vm2, %v3577_v29, 0.0 }
 0xa0e   : > { %2300 = vrot.lane.b32.xlu1 %v3833_v10, %s3682_s30 }
 0xa12   : > { %2387 = vrot.lane.b32.xlu1 %v3840_v14, %s3682_s30  ;;  %v1553_v14 = vadd.f32 %v3979_v27, %v3985_v31 }
 0xa21   : > { %v3382_v54 = vpop.f32.mrf.mxu0 }
 0xa22   : > { %v4045_v57 = vadd.f32 %v3382_v54, %v1548_v53 }
 0xa23   : > { %v2045_v58 = vpop.f32.mrf.mxu0 }
 0xa24   : > { %v4049_v10 = vadd.f32 %v2045_v58, %v1543_v55 }
 0xa25   : > { %v3385_v60 = vpop.f32.mrf.mxu0 }
 0xa26   : > { %v4053_v61 = vadd.f32 %v3385_v60, %v1558_v59 }
 0xa27   : > { %v2055_v23 = vpop.f32.mrf.mxu0 }
 0xa28   : > { %v4055_v26 = vadd.f32 %v2055_v23, %v1553_v14  ;;  %v3609_v23 = vld [vmem:[%s3820_s23 + $0x18] sm:$0xff] }
 0xa29   : > { %v3399_v24 = vpop.f32.mrf.mxu0 }
 0xa2a   : > { %v2253_v63 = vmul.f32 0.35355338, %v3399_v24 }
 0xa2b   : > { %v2241_v28 = vpop.f32.mrf.mxu0 }
 0xa2c   : > { %v2252_v62 = vmul.f32 0.35355338, %v2241_v28  ;;  %v2263_v25 = vsel %vm741_vm2, %v2253_v63, -inf }
 0xa2e   : > { %v2260_v0 = vsel %vm741_vm2, %v2252_v62, -inf }
 0xa2f   : > { %2261 = vmax.xlane.f32.xlu0 %v2260_v0 }
 0xa33   : > { %2264 = vmax.xlane.f32.xlu0 %v2263_v25 }
 0xa37   : > { %2282 = vadd.xlane.f32.xlu0 %v2281_v1 }
 0xa86   : > { %v2280_v27 = vpop.xlane.xlu1 %2279 }
 0xa87   : > { %3578 = vrcp.f32 %v2280_v27 }
 0xa8a   : > { %v2301_v31 = vpop.permute.xlu1 %2300 }
 0xa8b   : > { %3400 = vmatprep.subr.mxu1 %v2301_v31 }
 0xa8c   : > { %3401 = vmatpush3.msra.mxu1 %v2301_v31 }
 0xa8e   : > { %v2388_v2 = vpop.permute.xlu1 %2387 }
 0xa8f   : > { %3407 = vmatprep.subr.mxu0 %v2388_v2 }
 0xa90   : > { %3408 = vmatpush3.msra.mxu0 %v2388_v2 }
 0xa94   : > { %v3579_v3 = vpop.eup %3578 }
 0xa95   : > { %v2294_v4 = vmul.f32 %v3579_v3, %v3575_v49 }
 0xa97   : > { %3404 = vmatprep.mubr.msk.f32.mxu1 %vm741_vm2, %v2294_v4 }
 0xab8   : > { %v2262_v5 = vpop.xlane.xlu0 %2261 }
 0xab9   : > { %v2268_v6 = vsub.f32 %v2252_v62, %v2262_v5 }
 0xabb   : > { %v2274_v7 = vmul.f32 1.442695, %v2268_v6 }
 0xabc   : > { %v2265_v8 = vpop.xlane.xlu0 %2264 }
 0xabd   : > { %3580 = vpow2.f32 %v2274_v7  ;;  %v2269_v9 = vsub.f32 %v2253_v63, %v2265_v8 }
 0xabf   : > { %v2276_v11 = vmul.f32 1.442695, %v2269_v9 }
 0xac0   : > { %v2283_v17 = vpop.xlane.xlu0 %2282 }
 0xac1   : > { %3582 = vpow2.f32 %v2276_v11 }
 0xac2   : > { %3584 = vrcp.f32 %v2283_v17  ;;  %v2665_v17 = vld [vmem:[%s4268_s5] sm:$0xff] }
 0xaca   : > { %v3581_v13 = vpop.eup %3580 }
 0xacb   : > { %v2284_v15 = vsel %vm741_vm2, %v3581_v13, 0.0 }
 0xacc   : > { %2285 = vadd.xlane.f32.xlu1 %v2284_v15  ;;  %v2668_v15 = vld [vmem:[%s4268_s5 + $0x18] sm:$0xff] }
 0xace   : > { %v3583_v19 = vpop.eup %3582 }
 0xacf   : > { %v2287_v18 = vsel %vm741_vm2, %v3583_v19, 0.0  ;;  %v3585_v30 = vpop.eup %3584 }
 0xad0   : > { %2288 = vadd.xlane.f32.xlu0 %v2287_v18  ;;  %v2295_v33 = vmul.f32 %v3585_v30, %v3577_v29  ;;  %v2666_v18 = vld [vmem:[%s4268_s5 + $0x8] sm:$0xff]  ;;  %v2789_v30 = vld [vmem:[%s4270_s7 + $0x60] sm:$0xff] }
 0xadd   : > { %2385 = vrot.lane.b32.xlu1 %v3844_v16, %s3682_s30 }
 0xae6   : > { %2298 = vrot.lane.b32.xlu0 %v3835_v12, %s3682_s30  ;;  %s3616_s30 = scalar_lea.vmem %s3615_s22, 1024 }
 0xb55   : > { %v2286_v20 = vpop.xlane.xlu1 %2285 }
 0xb56   : > { %3586 = vrcp.f32 %v2286_v20  ;;  %v2792_v20 = vld [vmem:[%s4270_s7 + $0x78] sm:$0xff] }
 0xb59   : > { %v2386_v21 = vpop.permute.xlu1 %2385  ;;  %v2289_v22 = vpop.xlane.xlu0 %2288 }
 0xb5a   : > { %3588 = vrcp.f32 %v2289_v22  ;;  %3409 = vmatprep.subr.mxu0 %v2386_v21  ;;  %v2790_v22 = vld [vmem:[%s4270_s7 + $0x68] sm:$0xff] }
 0xb5b   : > { %3410 = vmatpush3.msra.mxu0 %v2386_v21  ;;  %v2791_v21 = vld [vmem:[%s4270_s7 + $0x70] sm:$0xff] }
 0xb5c   : > { %3422 = vmatprep.subr.mxu0 %v2668_v15 }
 0xb5d   : > { %v2299_v32 = vpop.permute.xlu0 %2298 }
 0xb5e   : > { %3402 = vmatprep.subr.mxu1 %v2299_v32 }
 0xb5f   : > { %3403 = vmatpush3.msra.mxu1 %v2299_v32  ;;  %v2788_v32 = vld [vmem:[%s4270_s7 + $0x58] sm:$0xff] }
 0xb60   : > { %3405 = vmatmul.mubr.msk.f32.vlgmr.msra.gmra.mxu1 %vm741_vm2, %v2295_v33  ;;  %3414 = vmatprep.subr.mxu1 %v3119_v36  ;;  %v2787_v33 = vld [vmem:[%s4270_s7 + $0x50] sm:$0xff] }
 0xb61   : > { %3415 = vmatpush3.msra.mxu1 %v3119_v36  ;;  %v2782_v36 = vld [vmem:[%s4270_s7 + $0x28] sm:$0xff] }
 0xb62   : > { %3436 = vmatprep.subr.mxu1 %v2792_v20 }
 0xb63   : > { %v3587_v16 = vpop.eup %3586 }
 0xb64   : > { %v2296_v34 = vmul.f32 %v3587_v16, %v3581_v13  ;;  %v2786_v16 = vld [vmem:[%s4270_s7 + $0x48] sm:$0xff] }
 0xb66   : > { %3411 = vmatprep.mubr.msk.f32.mxu0 %vm741_vm2, %v2296_v34  ;;  %v2785_v34 = vld [vmem:[%s4270_s7 + $0x40] sm:$0xff] }
 0xb67   : > { %v3589_v12 = vpop.eup %3588 }
 0xb68   : > { %v2297_v35 = vmul.f32 %v3589_v12, %v3583_v19  ;;  %v2667_v19 = vld [vmem:[%s4268_s5 + $0x10] sm:$0xff]  ;;  %v2784_v12 = vld [vmem:[%s4270_s7 + $0x38] sm:$0xff] }
 0xb6a   : > { %3412 = vmatmul.mubr.msk.f32.vlgmr.msra.gmra.mxu0 %vm741_vm2, %v2297_v35  ;;  %v2783_v35 = vld [vmem:[%s4270_s7 + $0x30] sm:$0xff] }
 0xb6b   : > { %3423 = vmatpush3.msra.mxu0 %v2668_v15 }
 0xb6c   : > { %3424 = vmatprep.subr.mxu0 %v2667_v19 }
 0xb6d   : > { %3425 = vmatpush3.msra.mxu0 %v2667_v19 }
 0xb6e   : > { %3426 = vmatprep.subr.mxu0 %v2666_v18 }
 0xb6f   : > { %3427 = vmatpush3.msra.mxu0 %v2666_v18 }
 0xb70   : > { %3428 = vmatprep.subr.mxu0 %v2665_v17 }
 0xb71   : > { %3429 = vmatpush3.msra.mxu0 %v2665_v17 }
 0xc20   : > { %v3406_v37 = vpop.f32.mrf.mxu1 }
 0xc22   : > { %v2376_v38 = vpop.f32.mrf.mxu1 }
 0xc23   : > { %3416 = vmatprep.mubr.msk.f32.mxu1 %vm564_vm1, %v2376_v38 }
 0xc24   : > { %3417 = vmatmul.mubr.msk.f32.vlgmr.msra.gmra.mxu1 %vm564_vm1, %v3406_v37  ;;  %v2781_v37 = vld [vmem:[%s4270_s7 + $0x20] sm:$0xff] }
 0xc25   : > { %3437 = vmatpush3.msra.mxu1 %v2792_v20 }
 0xc26   : > { %3438 = vmatprep.subr.mxu1 %v2791_v21 }
 0xc27   : > { %3439 = vmatpush3.msra.mxu1 %v2791_v21 }
 0xc28   : > { %3440 = vmatprep.subr.mxu1 %v2790_v22 }
 0xc29   : > { %3441 = vmatpush3.msra.mxu1 %v2790_v22 }
 0xc2a   : > { %v3413_v39 = vpop.f32.mrf.mxu0  ;;  %3442 = vmatprep.subr.mxu1 %v2789_v30 }
 0xc2b   : > { %3443 = vmatpush3.msra.mxu1 %v2789_v30 }
 0xc2c   : > { %v2463_v40 = vpop.f32.mrf.mxu0  ;;  %3444 = vmatprep.subr.mxu1 %v2788_v32 }
 0xc2d   : > { %3419 = vmatprep.mubr.msk.f32.mxu1 %vm564_vm1, %v2463_v40  ;;  %3445 = vmatpush3.msra.mxu1 %v2788_v32 }
 0xc2e   : > { %3420 = vmatmul.mubr.msk.f32.gmra.mxu1 %vm564_vm1, %v3413_v39  ;;  %3446 = vmatprep.subr.mxu1 %v2787_v33 }
 0xc2f   : > { %3447 = vmatpush3.msra.mxu1 %v2787_v33 }
 0xc30   : > { %3448 = vmatprep.subr.mxu1 %v2786_v16 }
 0xc31   : > { %3449 = vmatpush3.msra.mxu1 %v2786_v16 }
 0xc32   : > { %3450 = vmatprep.subr.mxu1 %v2785_v34 }
 0xc33   : > { %3451 = vmatpush3.msra.mxu1 %v2785_v34 }
 0xc34   : > { %3452 = vmatprep.subr.mxu1 %v2784_v12 }
 0xc35   : > { %3453 = vmatpush3.msra.mxu1 %v2784_v12 }
 0xc36   : > { %3454 = vmatprep.subr.mxu1 %v2783_v35 }
 0xc37   : > { %3455 = vmatpush3.msra.mxu1 %v2783_v35 }
 0xc38   : > { %3456 = vmatprep.subr.mxu1 %v2782_v36 }
 0xc39   : > { %3457 = vmatpush3.msra.mxu1 %v2782_v36 }
 0xc3a   : > { %3458 = vmatprep.subr.mxu1 %v2781_v37 }
 0xc3b   : > { %3459 = vmatpush3.msra.mxu1 %v2781_v37 }
 0xce4   : > { %v3418_v41 = vpop.f32.mrf.mxu1 }
 0xce5   : > { %v2572_v43 = vadd.f32 %v3418_v41, %v4045_v57 }
 0xce6   : > { %v2552_v44 = vpop.f32.mrf.mxu1 }
 0xce7   : > { %v2583_v45 = vadd.f32 %v3124_v42, %v2572_v43  ;;  %v2571_v46 = vadd.f32 %v2552_v44, %v4049_v10  ;;  %v3608_v10 = vld [vmem:[%s3820_s23 + $0x10] sm:$0xff]  ;;  %s436_s23 = scalar_lea.vmem [#allocation2], %s3048_s16 }
 0xce8   : > { %s2982_s17 = sshll.u32 %s436_s23, 4  ;;  %s4217_s17 = int_to_ptr.vmem [resolvable:$true] %s2982_s17 }
 0xce9   : > { %v2582_v47 = vadd.f32 %v3124_v42, %v2571_v46  ;;  %v2587_v49 = vadd.f32 %v3606_v48, %v2583_v45  ;;  %s3610_s16 = scalar_lea.vmem %s4217_s17, 512  ;;  %p3617_p0 = scmp.lt.s32.totalorder %s4217_s17, %s3615_s22 }
 0xcea   : > { %p3611_p11 = scmp.ne.s32.totalorder %s4217_s17, %s3610_s16  ;;  %p3618_p1 = scmp.lt.s32.totalorder %s3616_s30, %s3610_s16 }
 0xceb   : > { %v2593_v50 = vsel %vm460_vm0, %v2587_v49, 0.0  ;;  %v2586_v52 = vadd.f32 %v3607_v51, %v2582_v47 }
 0xcec   : > { %2594 = vadd.xlane.f32.xlu1 %v2593_v50  ;;  %p3612_p12 = pnand %p3611_p11, %p3794_p5  ;;  %p3619_p2 = por %p3618_p1, %p3617_p0 }
 0xced   : > { %v2590_v53 = vsel %vm460_vm0, %v2586_v52, 0.0 }
 0xcee   : > { %2591 = vadd.xlane.f32.xlu0 %v2590_v53  ;;  %v3421_v54 = vpop.f32.mrf.mxu1  ;;  %p3613_p13 = pneg %p3612_p12 }
 0xcef   : > { %v2574_v55 = vadd.f32 %v3421_v54, %v4053_v61 }
 0xcf0   : > { %v2562_v56 = vpop.f32.mrf.mxu1  ;;  %p3620_p3 = pnand %p3619_p2, %p3613_p13 }
 0xcf1   : > { %v2573_v57 = vadd.f32 %v2562_v56, %v4055_v26  ;;  %v2585_v58 = vadd.f32 %v3124_v42, %v2574_v55 }
 0xcf3   : > { %v2584_v59 = vadd.f32 %v3124_v42, %v2573_v57  ;;  %v2589_v24 = vadd.f32 %v3609_v23, %v2585_v58  ;;  %v3126_v57 = vld [vmem:[%s4273_s10] ss:$0 sm:$0xff] }
 0xcf5   : > { %v2588_v60 = vadd.f32 %v3608_v10, %v2584_v59  ;;  %v2599_v28 = vsel %vm460_vm0, %v2589_v24, 0.0 }
 0xcf7   : > { %v2596_v14 = vsel %vm460_vm0, %v2588_v60, 0.0 }
 0xcf8   : > { %2597 = vadd.xlane.f32.xlu0 %v2596_v14 }
 0xcfc   : > { %2600 = vadd.xlane.f32.xlu0 %v2599_v28 }
 0xd75   : > { %v2595_v62 = vpop.xlane.xlu1 %2594 }
 0xd76   : > { %v2604_v63 = vmul.f32 0.03125, %v2595_v62 }
 0xd77   : > { %v2592_v0 = vpop.xlane.xlu0 %2591 }
 0xd78   : > { %v4092_v25 = vsub.f32 %v2587_v49, %v2604_v63  ;;  %v2603_v61 = vmul.f32 0.03125, %v2592_v0  ;;  %v2780_v0 = vld [vmem:[%s4270_s7 + $0x18] sm:$0xff] }
 0xd79   : > { %3460 = vmatprep.subr.mxu1 %v2780_v0 }
 0xd7a   : > { %v4094_v29 = vsub.f32 %v2586_v52, %v2603_v61  ;;  %v2612_v26 = vmul.f32 %v4092_v25, %v4092_v25  ;;  %v3125_v52 = vld [vmem:[%s4272_s9] ss:$0 sm:$0xff]  ;;  %3461 = vmatpush3.msra.mxu1 %v2780_v0  ;;  %v2778_v61 = vld [vmem:[%s4270_s7 + $0x8] sm:$0xff] }
 0xd7c   : > { %v2618_v1 = vsel %vm460_vm0, %v2612_v26, 0.0  ;;  %v2611_v27 = vmul.f32 %v4094_v29, %v4094_v29  ;;  %v3127_v26 = vld [vmem:[%s4269_s6] ss:$0 sm:$0xff] }
 0xd7d   : > { %2619 = vadd.xlane.f32.xlu0 %v2618_v1 }
 0xd7e   : > { %v2615_v31 = vsel %vm460_vm0, %v2611_v27, 0.0 }
 0xd7f   : > { %2616 = vadd.xlane.f32.xlu1 %v2615_v31 }
 0xd81   : > { %v2598_v2 = vpop.xlane.xlu0 %2597 }
 0xd82   : > { %v2605_v3 = vmul.f32 0.03125, %v2598_v2 }
 0xd84   : > { %v4102_v4 = vsub.f32 %v2588_v60, %v2605_v3 }
 0xd85   : > { %v2601_v5 = vpop.xlane.xlu0 %2600 }
 0xd86   : > { %v2606_v6 = vmul.f32 0.03125, %v2601_v5  ;;  %v2613_v7 = vmul.f32 %v4102_v4, %v4102_v4 }
 0xd88   : > { %v4106_v8 = vsub.f32 %v2589_v24, %v2606_v6  ;;  %v2621_v9 = vsel %vm460_vm0, %v2613_v7, 0.0 }
 0xd89   : > { %2622 = vadd.xlane.f32.xlu1 %v2621_v9 }
 0xd8a   : > { %v2614_v11 = vmul.f32 %v4106_v8, %v4106_v8 }
 0xd8c   : > { %v2624_v13 = vsel %vm460_vm0, %v2614_v11, 0.0 }
 0xd8d   : > { %2625 = vadd.xlane.f32.xlu0 %v2624_v13  ;;  %v3132_v13 = vld [vmem:[%s4271_s8] ss:$0 sm:$0xff] }
 0xe06   : > { %v2620_v38 = vpop.xlane.xlu0 %2619 }
 0xe07   : > { %v2628_v39 = vmul.f32 0.03125, %v2620_v38 }
 0xe08   : > { %v2617_v40 = vpop.xlane.xlu1 %2616 }
 0xe09   : > { %v2632_v41 = vadd.f32 1e-05, %v2628_v39  ;;  %v2627_v42 = vmul.f32 0.03125, %v2617_v40 }
 0xe0b   : > { %3590 = vrsqrt.f32 %v2632_v41  ;;  %v2631_v43 = vadd.f32 1e-05, %v2627_v42 }
 0xe0d   : > { %3592 = vrsqrt.f32 %v2631_v43 }
 0xe12   : > { %v2623_v44 = vpop.xlane.xlu1 %2622 }
 0xe13   : > { %v2629_v45 = vmul.f32 0.03125, %v2623_v44 }
 0xe15   : > { %v2633_v46 = vadd.f32 1e-05, %v2629_v45 }
 0xe16   : > { %v2626_v47 = vpop.xlane.xlu0 %2625 }
 0xe17   : > { %3594 = vrsqrt.f32 %v2633_v46  ;;  %v2630_v48 = vmul.f32 0.03125, %v2626_v47 }
 0xe18   : > { %v3591_v49 = vpop.eup %3590 }
 0xe19   : > { %v2640_v50 = vmul.f32 %v3591_v49, %v4092_v25  ;;  %v2634_v51 = vadd.f32 1e-05, %v2630_v48  ;;  %v2779_v25 = vld [vmem:[%s4270_s7 + $0x10] sm:$0xff] }
 0xe1a   : > { %v3593_v53 = vpop.eup %3592  ;;  %3462 = vmatprep.subr.mxu1 %v2779_v25 }
 0xe1b   : > { %3596 = vrsqrt.f32 %v2634_v51  ;;  %v2639_v54 = vmul.f32 %v3593_v53, %v4094_v29  ;;  %v2651_v55 = vmul.f32 %v3125_v52, %v2640_v50  ;;  %3463 = vmatpush3.msra.mxu1 %v2779_v25  ;;  %v2777_v29 = vld [vmem:[%s4270_s7] sm:$0xff] }
 0xe1c   : > { %3464 = vmatprep.subr.mxu1 %v2778_v61 }
 0xe1d   : > { %v2650_v56 = vmul.f32 %v3125_v52, %v2639_v54  ;;  %v2662_v59 = vadd.f32 %v3126_v57, %v2651_v55  ;;  %3465 = vmatpush3.msra.mxu1 %v2778_v61  ;;  %v3133_v61 = vld [vmem:[%s4274_s11] ss:$0 sm:$0xff] }
 0xe1e   : > { %3466 = vmatprep.subr.mxu1 %v2777_v29 }
 0xe1f   : > { %v2661_v58 = vadd.f32 %v3126_v57, %v2650_v56  ;;  %3467 = vmatpush3.msra.mxu1 %v2777_v29 }
 0xe21   : > { %3430 = vmatprep.mubr.msk.f32.mxu0 %vm460_vm0, %v2661_v58 }
 0xe22   : > { %3431 = vmatmul.mubr.msk.f32.vlgmr.msra.gmra.mxu0 %vm460_vm0, %v2662_v59 }
 0xe24   : > { %v3595_v10 = vpop.eup %3594 }
 0xe25   : > { %v2641_v60 = vmul.f32 %v3595_v10, %v4102_v4 }
 0xe27   : > { %v2652_v14 = vmul.f32 %v3125_v52, %v2641_v60 }
 0xe28   : > { %v3597_v23 = vpop.eup %3596 }
 0xe29   : > { %v2663_v24 = vadd.f32 %v3126_v57, %v2652_v14  ;;  %v2642_v28 = vmul.f32 %v3597_v23, %v4106_v8 }
 0xe2b   : > { %3433 = vmatprep.mubr.msk.f32.mxu0 %vm460_vm0, %v2663_v24  ;;  %v2653_v62 = vmul.f32 %v3125_v52, %v2642_v28 }
 0xe2d   : > { %v2664_v63 = vadd.f32 %v3126_v57, %v2653_v62 }
 0xe2f   : > { %3434 = vmatmul.mubr.msk.f32.gmra.mxu0 %vm460_vm0, %v2664_v63 }
 0xee2   : > { %v3432_v1 = vpop.f32.mrf.mxu0 }
 0xee3   : > { %v2760_v27 = vadd.f32 %v3432_v1, %v3127_v26 }
 0xee4   : > { %v2754_v31 = vpop.f32.mrf.mxu0 }
 0xee5   : > { %v2755_v2 = vadd.f32 %v3127_v26, %v2754_v31  ;;  %v2774_v4 = vmax.f32 %v2760_v27, 0.0  ;;  %v3134_v27 = vld [vmem:[%s4275_s12] ss:$0 sm:$0xff] }
 0xee7   : > { %v2773_v3 = vmax.f32 %v2755_v2, 0.0 }
 0xee9   : > { %3468 = vmatprep.mubr.f32.mxu1 %v2773_v3 }
 0xeea   : > { %3469 = vmatmul.mubr.f32.vlgmr.msra.gmra.mxu1 %v2774_v4 }
 0xeef   : > { %v3435_v5 = vpop.f32.mrf.mxu0 }
 0xef0   : > { %v2770_v6 = vadd.f32 %v3435_v5, %v3127_v26 }
 0xef1   : > { %v2764_v7 = vpop.f32.mrf.mxu0 }
 0xef2   : > { %v2765_v8 = vadd.f32 %v3127_v26, %v2764_v7  ;;  %v2776_v11 = vmax.f32 %v2770_v6, 0.0 }
 0xef4   : > { %v2775_v9 = vmax.f32 %v2765_v8, 0.0 }
 0xef6   : > { %3471 = vmatprep.mubr.f32.mxu1 %v2775_v9 }
 0xef7   : > { %3472 = vmatmul.mubr.f32.gmra.mxu1 %v2776_v11 }
 0xfaa   : > { %v3470_v15 = vpop.f32.mrf.mxu1 }
 0xfab   : > { %v2872_v19 = vadd.f32 %v3470_v15, %v3132_v13 }
 0xfac   : > { %v2866_v18 = vpop.f32.mrf.mxu1 }
 0xfad   : > { %v2867_v17 = vadd.f32 %v3132_v13, %v2866_v18  ;;  %v2886_v20 = vadd.f32 %v2872_v19, %v2662_v59 }
 0xfaf   : > { %v2892_v21 = vsel %vm460_vm0, %v2886_v20, 0.0  ;;  %v2885_v22 = vadd.f32 %v2867_v17, %v2661_v58 }
 0xfb0   : > { %2893 = vadd.xlane.f32.xlu0 %v2892_v21 }
 0xfb1   : > { %v2889_v30 = vsel %vm460_vm0, %v2885_v22, 0.0 }
 0xfb2   : > { %2890 = vadd.xlane.f32.xlu1 %v2889_v30 }
 0xfb7   : > { %v3473_v32 = vpop.f32.mrf.mxu1 }
 0xfb8   : > { %v2882_v33 = vadd.f32 %v3473_v32, %v3132_v13 }
 0xfb9   : > { %v2876_v16 = vpop.f32.mrf.mxu1 }
 0xfba   : > { %v2877_v34 = vadd.f32 %v3132_v13, %v2876_v16  ;;  %v2888_v12 = vadd.f32 %v2882_v33, %v2664_v63 }
 0xfbc   : > { %v2898_v35 = vsel %vm460_vm0, %v2888_v12, 0.0  ;;  %v2887_v36 = vadd.f32 %v2877_v34, %v2663_v24 }
 0xfbd   : > { %2899 = vadd.xlane.f32.xlu0 %v2898_v35 }
 0xfbe   : > { %v2895_v37 = vsel %vm460_vm0, %v2887_v36, 0.0 }
 0xfbf   : > { %2896 = vadd.xlane.f32.xlu1 %v2895_v37 }
0x1039   : > { %v2894_v38 = vpop.xlane.xlu0 %2893 }
0x103a   : > { %v2902_v39 = vmul.f32 0.03125, %v2894_v38 }
0x103b   : > { %v2891_v40 = vpop.xlane.xlu1 %2890 }
0x103c   : > { %v2906_v41 = vsub.f32 %v2886_v20, %v2902_v39  ;;  %v2901_v42 = vmul.f32 0.03125, %v2891_v40 }
0x103e   : > { %v2905_v43 = vsub.f32 %v2885_v22, %v2901_v42  ;;  %v2910_v44 = vmul.f32 %v2906_v41, %v2906_v41 }
0x1040   : > { %v2916_v45 = vsel %vm460_vm0, %v2910_v44, 0.0  ;;  %v2909_v46 = vmul.f32 %v2905_v43, %v2905_v43 }
0x1041   : > { %2917 = vadd.xlane.f32.xlu0 %v2916_v45 }
0x1042   : > { %v2913_v47 = vsel %vm460_vm0, %v2909_v46, 0.0 }
0x1043   : > { %2914 = vadd.xlane.f32.xlu1 %v2913_v47 }
0x1046   : > { %v2900_v48 = vpop.xlane.xlu0 %2899 }
0x1047   : > { %v2904_v49 = vmul.f32 0.03125, %v2900_v48 }
0x1048   : > { %v2897_v50 = vpop.xlane.xlu1 %2896 }
0x1049   : > { %v2908_v51 = vsub.f32 %v2888_v12, %v2904_v49  ;;  %v2903_v52 = vmul.f32 0.03125, %v2897_v50 }
0x104b   : > { %v2907_v53 = vsub.f32 %v2887_v36, %v2903_v52  ;;  %v2912_v54 = vmul.f32 %v2908_v51, %v2908_v51 }
0x104d   : > { %v2922_v55 = vsel %vm460_vm0, %v2912_v54, 0.0  ;;  %v2911_v56 = vmul.f32 %v2907_v53, %v2907_v53 }
0x104e   : > { %2923 = vadd.xlane.f32.xlu0 %v2922_v55 }
0x104f   : > { %v2919_v57 = vsel %vm460_vm0, %v2911_v56, 0.0 }
0x1050   : > { %2920 = vadd.xlane.f32.xlu1 %v2919_v57 }
0x10ca   : > { %v2918_v58 = vpop.xlane.xlu0 %2917 }
0x10cb   : > { %v2926_v59 = vmul.f32 0.03125, %v2918_v58 }
0x10cc   : > { %v2915_v10 = vpop.xlane.xlu1 %2914 }
0x10cd   : > { %v2930_v60 = vadd.f32 1e-05, %v2926_v59  ;;  %v2925_v14 = vmul.f32 0.03125, %v2915_v10 }
0x10cf   : > { %3598 = vrsqrt.f32 %v2930_v60  ;;  %v2929_v23 = vadd.f32 1e-05, %v2925_v14 }
0x10d1   : > { %3600 = vrsqrt.f32 %v2929_v23 }
0x10d7   : > { %v2924_v24 = vpop.xlane.xlu0 %2923 }
0x10d8   : > { %v2928_v28 = vmul.f32 0.03125, %v2924_v24 }
0x10d9   : > { %v2921_v62 = vpop.xlane.xlu1 %2920 }
0x10da   : > { %v2932_v63 = vadd.f32 1e-05, %v2928_v28  ;;  %v2927_v0 = vmul.f32 0.03125, %v2921_v62 }
0x10dc   : > { %v3599_v25 = vpop.eup %3598  ;;  %3602 = vrsqrt.f32 %v2932_v63  ;;  %v2931_v29 = vadd.f32 1e-05, %v2927_v0 }
0x10dd   : > { %v2938_v26 = vmul.f32 %v3599_v25, %v2906_v41 }
0x10de   : > { %v3601_v1 = vpop.eup %3600  ;;  %3604 = vrsqrt.f32 %v2931_v29 }
0x10df   : > { %v2949_v31 = vmul.f32 %v3133_v61, %v2938_v26  ;;  %v2937_v2 = vmul.f32 %v3601_v1, %v2905_v43 }
0x10e1   : > { %v2960_v3 = vadd.f32 %v3134_v27, %v2949_v31  ;;  %v2948_v4 = vmul.f32 %v3133_v61, %v2937_v2 }
0x10e3   : > { %v2959_v5 = vadd.f32 %v3134_v27, %v2948_v4  ;;  %2964 = vst.msk [vmem:[%s436_s23 + $0x8] sm:$0xff] %vm460_vm0, %v2960_v3 }
0x10e5   : > { %2963 = vst.msk [vmem:[%s436_s23] sm:$0xff] %vm460_vm0, %v2959_v5 }
0x10e9   : > { %v3603_v6 = vpop.eup %3602 }
0x10ea   : > { %v2940_v7 = vmul.f32 %v3603_v6, %v2908_v51 }
0x10eb   : > { %v3605_v8 = vpop.eup %3604 }
0x10ec   : > { %v2951_v9 = vmul.f32 %v3133_v61, %v2940_v7  ;;  %v2939_v11 = vmul.f32 %v3605_v8, %v2907_v53 }
0x10ee   : > { %v2962_v13 = vadd.f32 %v3134_v27, %v2951_v9  ;;  %v2950_v15 = vmul.f32 %v3133_v61, %v2939_v11 }
0x10f0   : > { %v2961_v19 = vadd.f32 %v3134_v27, %v2950_v15  ;;  %2966 = vst.msk [vmem:[%s436_s23 + $0x18] sm:$0xff] %vm460_vm0, %v2962_v13 }
0x10f2   : > { %2965 = vst.msk [vmem:[%s436_s23 + $0x10] sm:$0xff] %vm460_vm0, %v2961_v19 }
0x10f3   : > { %3623 = shalt.err (!%p3620_p3)
}
0x10f4   : > { %s3624_s24 = scalar_lea.hbm %s4215_s20, 512  ;;  %s3628_s21 = scalar_lea.hbm %s4276_s13, 1024 }
0x10f5   : > { %p3625_p4 = scmp.ne.s32.totalorder %s4215_s20, %s3624_s24  ;;  %p3629_p9 = scmp.lt.s32.totalorder %s4215_s20, %s4276_s13 }
0x10f6   : > { %p3630_p10 = scmp.lt.s32.totalorder %s3628_s21, %s3624_s24 }
0x10f7   : > { %p3626_p7 = pnand %p3625_p4, %p3794_p5 }
0x10f8   : > { %p3631_p11 = por %p3630_p10, %p3629_p9 }
0x10f9   : > { %p3627_p8 = pneg %p3626_p7 }
0x10fb   : > { %p3632_p12 = pnand %p3631_p11, %p3627_p8 }
0x10fd   : > { %3635 = shalt.err (!%p3632_p12)
}
0x10fe   : > { %s3684_s16 = smov 128   ;;  %s3685_s22 = smov 8  }
0x10ff   : > { %3474 = dma.vmem_to_hbm [thread:$0]  (%p3794_p5), %s4217_s17, 512, %s4215_s20, %s4223_s29, %s3684_s16, %s3684_s16, %s3685_s22  }
0x1100 PF: > { %p3480_p13 = scmp.ge.s32.totalorder %s3670_s28, 2  ;;  %s2997_s30 = sand.u32 1, %s3658_s25  }
0x1101   : > { %s2998_s0 = scalar_lea.sflag [#allocation3], %s2997_s30 }
0x1102   : > { %p3477_p0 = pnand %p3480_p13, %p3798_p6 }
0x1104   : > { %p3478_p1 = pneg %p3477_p0 }
0x1106   : > { %3653 = dma.done.wait (%p3478_p1), %s2998_s0, 512  }
0x1107   : > { %3655 = vsyncadd (%p3478_p1), %s2998_s0, 4294966784  ;;  %s4284_s1 = sld [smem:[#allocation5_spill]]  ;;  %p23_p2 = scmp.ge.s32.totalorder %s3781_s14, 4  }
0x1108   : > { %s4285_s25 = smov %s3662_s26  ;;  %s4286_s26 = smov %s3666_s27 }
0x1109   : > { %s4288_s28 = smov %s3781_s14  ;;  %25 = sbr.rel (!%p23_p2) target bundleno = 6 (0x6), region = 110 }
0x110d   : > { %s4287_s27 = smov %s4284_s1 }
0x110e   :  { %3003 = vsyncpa [#allocation3], 1 }
0x110f   :  { %3005 = vsyncpa [#allocation3 + $0x1], 1 }

</bundles_post_ra>
